<compile_context>
chip_gen: v7x
topology: tpu7x:2x2x1
jax: 0.10.0
libtpu: 0.0.40
codegen_flags: <defaults>
</compile_context>

<pallas_src>
import functools

import jax
import jax.numpy as jnp
from jax import lax
from jax.experimental import pallas as pl
from jax.experimental.pallas import tpu as pltpu

H_IN = 1024   # HuBERT hidden size / fc1 in_features
H_MID = 512   # fc1 out_features / bn1 num_features
BN_EPS = 1e-5


def _gtr_kernel(h_ref, w1_ref, c_ref, w2_ref, b2_ref, out_ref, acc_ref,
                *, seq_len, seq_tile):
    s = pl.program_id(1)
    last = pl.num_programs(1) - 1

    @pl.when(s == 0)
    def _():
        acc_ref[...] = jnp.zeros_like(acc_ref)

    ragged = (seq_len % seq_tile) != 0
    if ragged:
        # Hot path: full tiles, plain fused-widen reduction.
        @pl.when(s < last)
        def _():
            acc_ref[...] += jnp.sum(h_ref[...], axis=1, dtype=jnp.float32)

        # Final (overhanging) tile: Pallas pads with undefined data, so mask.
        @pl.when(s == last)
        def _():
            h = h_ref[...].astype(jnp.float32)
            pos = s * seq_tile + lax.broadcasted_iota(jnp.int32, h.shape, 1)
            h = jnp.where(pos < seq_len, h, 0.0)
            acc_ref[...] += jnp.sum(h, axis=1)
    else:
        acc_ref[...] += jnp.sum(h_ref[...], axis=1, dtype=jnp.float32)

    @pl.when(s == last)
    def _():
        avg = acc_ref[...] * (1.0 / seq_len)                  # mean over sequence
        # fc1 with BatchNorm (eval) + bias folded into weight / offset.
        y = jnp.dot(avg, w1_ref[...],
                    preferred_element_type=jnp.float32) + c_ref[...]
        y = jnp.maximum(y, 0.0)                               # ReLU; dropout = identity
        # fc2 (512 -> 1): VPU multiply + lane reduce.
        out_ref[...] = (jnp.sum(y * w2_ref[...], axis=-1, keepdims=True)
                        + b2_ref[...])


def prepare_params(params):
    """One-time fold of BN(eval) + fc1 bias into fc1, plus layout prep."""
    scale = params["bn1_gamma"] * lax.rsqrt(params["bn1_running_var"] + BN_EPS)
    w1_fold = params["fc1_w"].T * scale[None, :]              # (1024, 512) f32
    c = ((params["fc1_b"] - params["bn1_running_mean"]) * scale
         + params["bn1_beta"]).reshape(1, H_MID)              # (1, 512)
    w2_row = params["fc2_w"].reshape(1, H_MID)                 # (1, 512)
    b2 = params["fc2_b"].reshape(1, 1)                         # (1, 1)
    return {"w1": w1_fold, "c": c, "w2": w2_row, "b2": b2}


def _tpu_config():
    """(vmem_limit_bytes, activation_tile_byte_target, num_tensorcores)."""
    vmem_cap = 64 << 20
    cores = 1
    try:
        info = pltpu.get_tpu_info()
        vmem_cap = int(getattr(info, "vmem_capacity_bytes", vmem_cap))
    except Exception:
        pass
    try:
        kind = jax.devices()[0].device_kind.lower()
        if "v7" in kind:
            cores = 2
    except Exception:
        pass
    if vmem_cap >= (128 << 20):
        # v5e / v6e: raise the scoped VMEM limit, use big streaming tiles.
        return 100 << 20, 24 << 20, cores
    # v7x (64 MiB VMEM) or unknown: stay conservative.
    return 48 << 20, 10 << 20, cores


def _const_spec(shape):
    """BlockSpec for grid-constant operands; single-buffered when supported."""
    idx = lambda b, s: (0, 0)
    if hasattr(pl, "Buffered"):
        try:
            return pl.BlockSpec(shape, idx, pipeline_mode=pl.Buffered(1))
        except TypeError:
            pass
    return pl.BlockSpec(shape, idx)


def gtr_regressor(hidden_states, prepared):
    """hidden_states: (B, S, 1024) f32/bf16 -- HuBERT last_hidden_state."""
    B, S, H = hidden_states.shape
    assert H == H_IN

    vmem_limit, tile_bytes, cores = _tpu_config()

    # Batch tile: output block (bb, 1) requires bb % 8 == 0 or bb == B.
    if cores >= 2 and B >= 16 and B % 8 == 0:
        bb = 8                       # nb >= 2 keeps both v7x TensorCores busy
    elif B >= 32 and B % 32 == 0:
        bb = 32                      # single-TC: fewer epilogue phases
    elif B >= 16 and B % 16 == 0:
        bb = 16
    elif B >= 16 and B % 8 == 0:
        bb = 8
    else:
        bb = B
    nb = pl.cdiv(B, bb)
    # TODO(synk): for B == 1 on v7x, a split sequence reduction (2 parallel
    # partial sums combined in JAX) would engage the second TensorCore.

    # Sequence tile sized for ~tile_bytes per (double-buffered) block,
    # multiple of 8 (sublane constraint), capped at S.
    itemsize = jnp.dtype(hidden_states.dtype).itemsize
    ts = tile_bytes // (bb * H_IN * itemsize)
    ts = max(8, (ts // 8) * 8)
    if ts >= S:
        ts = S
    ns = pl.cdiv(S, ts)

    kernel = functools.partial(_gtr_kernel, seq_len=S, seq_tile=ts)

    grid_spec = pltpu.PrefetchScalarGridSpec(
        num_scalar_prefetch=0,
        grid=(nb, ns),
        in_specs=[
            pl.BlockSpec((bb, ts, H_IN), lambda b, s: (b, s, 0)),   # activations
            _const_spec((H_IN, H_MID)),                             # folded fc1 weight
            _const_spec((1, H_MID)),                                # folded fc1/BN bias
            _const_spec((1, H_MID)),                                # fc2 weight row
            _const_spec((1, 1)),                                    # fc2 bias
        ],
        out_specs=pl.BlockSpec((bb, 1), lambda b, s: (b, 0)),
        scratch_shapes=[pltpu.VMEM((bb, H_IN), jnp.float32)],       # pooling accumulator
    )

    return pl.pallas_call(
        kernel,
        out_shape=jax.ShapeDtypeStruct((B, 1), jnp.float32),
        grid_spec=grid_spec,
        compiler_params=pltpu.CompilerParams(
            dimension_semantics=("parallel", "arbitrary"),
            vmem_limit_bytes=vmem_limit,
        ),
    )(hidden_states, prepared["w1"], prepared["c"], prepared["w2"], prepared["b2"])


def init_params(key):
    k1, k2, k3, k4 = jax.random.split(key, 4)
    return {
        "fc1_w": jax.random.normal(k1, (H_MID, H_IN), jnp.float32) * 0.02,
        "fc1_b": jnp.zeros((H_MID,), jnp.float32),
        "bn1_gamma": jnp.ones((H_MID,), jnp.float32),
        "bn1_beta": jnp.zeros((H_MID,), jnp.float32),
        "bn1_running_mean": jax.random.normal(k2, (H_MID,), jnp.float32) * 0.1,
        "bn1_running_var": jnp.ones((H_MID,), jnp.float32)
                           + 0.1 * jax.random.uniform(k3, (H_MID,), jnp.float32),
        "fc2_w": jax.random.normal(k4, (1, H_MID), jnp.float32) * 0.02,
        "fc2_b": jnp.zeros((1,), jnp.float32),
    }


def reference(hidden_states, params):
    """Plain JAX reference of the regressor head (eval mode)."""
    h = hidden_states.astype(jnp.float32)
    avg = jnp.mean(h, axis=1)
    y = avg @ params["fc1_w"].T + params["fc1_b"]
    y = (y - params["bn1_running_mean"]) / jnp.sqrt(params["bn1_running_var"] + BN_EPS)
    y = y * params["bn1_gamma"] + params["bn1_beta"]
    y = jnp.maximum(y, 0.0)
    return y @ params["fc2_w"].T + params["fc2_b"]


if __name__ == "__main__":
    key = jax.random.PRNGKey(0)
    k_h, k_p = jax.random.split(key)

    B, S = 2, 8  # small batch / short sequence of HuBERT frames
    # bf16 activations (as a HuBERT encoder would produce) to halve HBM traffic.
    hidden_states = jax.random.normal(
        k_h, (B, S, H_IN), jnp.float32).astype(jnp.bfloat16)
    params = init_params(k_p)
    prepared = prepare_params(params)

    out = jax.block_until_ready(gtr_regressor(hidden_states, prepared))
    ref = reference(hidden_states, params)

    assert out.shape == (B, 1)
    assert jnp.allclose(out, ref, atol=1e-3, rtol=1e-3), (out, ref)

    print("KERNEL_OK")
</pallas_src>

<mosaic_0001>
module attributes {stable_mosaic.version = 11 : i64} {
  func.func @_gtr_kernel(%arg0: i32, %arg1: i32, %arg2: memref<2x8x1024xbf16, #tpu.memory_space<vmem>>, %arg3: memref<1024x512xf32, #tpu.memory_space<vmem>>, %arg4: memref<1x512xf32, #tpu.memory_space<vmem>>, %arg5: memref<1x512xf32, #tpu.memory_space<vmem>>, %arg6: memref<1x1xf32, #tpu.memory_space<vmem>>, %arg7: memref<2x1xf32, #tpu.memory_space<vmem>>, %arg8: memref<2x1024xf32, #tpu.memory_space<vmem>>) attributes {dimension_semantics = [#tpu.dimension_semantics<parallel>, #tpu.dimension_semantics<arbitrary>], iteration_bounds = array<i64: 1, 1>, scalar_prefetch = 0 : i64, scratch_operands = 1 : i64, tpu.core_type = #tpu.core_type<tc>, window_params = [{transform_indices = @transform_0, window_bounds = array<i64: 2, 8, 1024>}, {pipeline_mode = #tpu.pipeline_mode<synchronous>, transform_indices = @transform_1, window_bounds = array<i64: 1024, 512>}, {pipeline_mode = #tpu.pipeline_mode<synchronous>, transform_indices = @transform_2, window_bounds = array<i64: 1, 512>}, {pipeline_mode = #tpu.pipeline_mode<synchronous>, transform_indices = @transform_3, window_bounds = array<i64: 1, 512>}, {pipeline_mode = #tpu.pipeline_mode<synchronous>, transform_indices = @transform_4, window_bounds = array<i64: 1, 1>}, {transform_indices = @transform_5, window_bounds = array<i64: 2, 1>}]} {
    %c0_i32 = arith.constant 0 : i32
    %0 = arith.cmpi eq, %arg1, %c0_i32 : i32
    %1 = arith.extui %0 : i1 to i32
    %c0_i32_0 = arith.constant 0 : i32
    %2 = arith.cmpi ne, %1, %c0_i32_0 : i32
    scf.if %2 {
      %cst_9 = arith.constant 0.000000e+00 : f32
      %12 = vector.broadcast %cst_9 : f32 to vector<2x1024xf32>
      %c0_10 = arith.constant 0 : index
      %c0_11 = arith.constant 0 : index
      %13 = vector.load %arg8[%c0_10, %c0_11] : memref<2x1024xf32, #tpu.memory_space<vmem>>, vector<2x1024xf32>
      tpu.vector_store %arg8[%c0_10, %c0_11], %12 {strides = array<i32>} : memref<2x1024xf32, #tpu.memory_space<vmem>>, vector<2x1024xf32>,
    } else {
    }
    %c0 = arith.constant 0 : index
    %c0_1 = arith.constant 0 : index
    %3 = vector.load %arg8[%c0, %c0_1] : memref<2x1024xf32, #tpu.memory_space<vmem>>, vector<2x1024xf32>
    %c0_2 = arith.constant 0 : index
    %c0_3 = arith.constant 0 : index
    %c0_4 = arith.constant 0 : index
    %4 = vector.load %arg2[%c0_2, %c0_3, %c0_4] : memref<2x8x1024xbf16, #tpu.memory_space<vmem>>, vector<2x8x1024xbf16>
    %5 = arith.extf %4 : vector<2x8x1024xbf16> to vector<2x8x1024xf32>
    %cst = arith.constant dense<0.000000e+00> : vector<2x1024xf32>
    %6 = vector.multi_reduction <add>, %5, %cst [1] : vector<2x8x1024xf32> to vector<2x1024xf32>
    %7 = arith.addf %3, %6 : vector<2x1024xf32>
    %c0_5 = arith.constant 0 : index
    %c0_6 = arith.constant 0 : index
    %8 = vector.load %arg8[%c0_5, %c0_6] : memref<2x1024xf32, #tpu.memory_space<vmem>>, vector<2x1024xf32>
    tpu.vector_store %arg8[%c0_5, %c0_6], %7 {strides = array<i32>} : memref<2x1024xf32, #tpu.memory_space<vmem>>, vector<2x1024xf32>,
    %c0_i32_7 = arith.constant 0 : i32
    %9 = arith.cmpi eq, %arg1, %c0_i32_7 : i32
    %10 = arith.extui %9 : i1 to i32
    %c0_i32_8 = arith.constant 0 : i32
    %11 = arith.cmpi ne, %10, %c0_i32_8 : i32
    scf.if %11 {
      %c0_9 = arith.constant 0 : index
      %c0_10 = arith.constant 0 : index
      %12 = vector.load %arg8[%c0_9, %c0_10] : memref<2x1024xf32, #tpu.memory_space<vmem>>, vector<2x1024xf32>
      %cst_11 = arith.constant 1.250000e-01 : f32
      %13 = vector.broadcast %cst_11 : f32 to vector<2x1024xf32>
      %14 = arith.mulf %12, %13 : vector<2x1024xf32>
      %c0_12 = arith.constant 0 : index
      %c0_13 = arith.constant 0 : index
      %15 = vector.load %arg3[%c0_12, %c0_13] : memref<1024x512xf32, #tpu.memory_space<vmem>>, vector<1024x512xf32>
      %cst_14 = arith.constant dense<0.000000e+00> : vector<2x512xf32>
      %16 = tpu.matmul %14, %15, %cst_14 {dimension_numbers = #tpu.dot_dimension_numbers<[1], [0], [0], [1], [0, 0, 1, 1], [], []>} : vector<2x1024xf32>, vector<1024x512xf32>, vector<2x512xf32> -> vector<2x512xf32>
      %c0_15 = arith.constant 0 : index
      %c0_16 = arith.constant 0 : index
      %17 = vector.load %arg4[%c0_15, %c0_16] : memref<1x512xf32, #tpu.memory_space<vmem>>, vector<1x512xf32>
      %18 = vector.broadcast %17 : vector<1x512xf32> to vector<2x512xf32>
      %19 = arith.addf %16, %18 : vector<2x512xf32>
      %cst_17 = arith.constant 0.000000e+00 : f32
      %20 = vector.broadcast %cst_17 : f32 to vector<2x512xf32>
      %21 = arith.maximumf %19, %20 : vector<2x512xf32>
      %c0_18 = arith.constant 0 : index
      %c0_19 = arith.constant 0 : index
      %22 = vector.load %arg5[%c0_18, %c0_19] : memref<1x512xf32, #tpu.memory_space<vmem>>, vector<1x512xf32>
      %23 = vector.broadcast %22 : vector<1x512xf32> to vector<2x512xf32>
      %24 = arith.mulf %21, %23 : vector<2x512xf32>
      %cst_20 = arith.constant dense<0.000000e+00> : vector<2xf32>
      %25 = vector.multi_reduction <add>, %24, %cst_20 [1] : vector<2x512xf32> to vector<2xf32>
      %26 = vector.shape_cast %25 : vector<2xf32> to vector<2x1xf32>
      %c0_21 = arith.constant 0 : index
      %c0_22 = arith.constant 0 : index
      %27 = vector.load %arg6[%c0_21, %c0_22] : memref<1x1xf32, #tpu.memory_space<vmem>>, vector<1x1xf32>
      %28 = vector.broadcast %27 : vector<1x1xf32> to vector<2x1xf32>
      %29 = arith.addf %26, %28 : vector<2x1xf32>
      %c0_23 = arith.constant 0 : index
      %c0_24 = arith.constant 0 : index
      %30 = vector.load %arg7[%c0_23, %c0_24] : memref<2x1xf32, #tpu.memory_space<vmem>>, vector<2x1xf32>
      tpu.vector_store %arg7[%c0_23, %c0_24], %29 {strides = array<i32>} : memref<2x1xf32, #tpu.memory_space<vmem>>, vector<2x1xf32>,
    } else {
    }
    return
  }
  func.func @transform_0(%arg0: i32, %arg1: i32) -> (i32, i32, i32) {
    %c0_i32 = arith.constant 0 : i32
    %c0_i32_0 = arith.constant 0 : i32
    return %arg0, %arg1, %c0_i32 : i32, i32, i32
  }
  func.func @transform_1(%arg0: i32, %arg1: i32) -> (i32, i32) {
    %c0_i32 = arith.constant 0 : i32
    %c0_i32_0 = arith.constant 0 : i32
    %c0_i32_1 = arith.constant 0 : i32
    return %c0_i32, %c0_i32_0 : i32, i32
  }
  func.func @transform_2(%arg0: i32, %arg1: i32) -> (i32, i32) {
    %c0_i32 = arith.constant 0 : i32
    %c0_i32_0 = arith.constant 0 : i32
    %c0_i32_1 = arith.constant 0 : i32
    return %c0_i32, %c0_i32_0 : i32, i32
  }
  func.func @transform_3(%arg0: i32, %arg1: i32) -> (i32, i32) {
    %c0_i32 = arith.constant 0 : i32
    %c0_i32_0 = arith.constant 0 : i32
    %c0_i32_1 = arith.constant 0 : i32
    return %c0_i32, %c0_i32_0 : i32, i32
  }
  func.func @transform_4(%arg0: i32, %arg1: i32) -> (i32, i32) {
    %c0_i32 = arith.constant 0 : i32
    %c0_i32_0 = arith.constant 0 : i32
    %c0_i32_1 = arith.constant 0 : i32
    return %c0_i32, %c0_i32_0 : i32, i32
  }
  func.func @transform_5(%arg0: i32, %arg1: i32) -> (i32, i32) {
    %c0_i32 = arith.constant 0 : i32
    %c0_i32_0 = arith.constant 0 : i32
    return %arg0, %c0_i32 : i32, i32
  }
}

</mosaic_0001>

<bundles_post_ra>
// kernel: tpu_custom_call.1
= control target key start
LH: loop header
LB: loop body
LE: loop exit
PB: predicated region body
PF: predicated region fallthrough
CT: control target
= control target key end

     0   :  { %s2631_s0 = inlined_call_operand.hbm [shape: bf16[2,8,1024], index: 0, kind: input, shape index: {}]   ;;  %s2632_s1 = inlined_call_operand.hbm [shape: f32[1024,512], index: 1, kind: input, shape index: {}]   ;;  %s2633_s2 = inlined_call_operand.hbm [shape: f32[1,512], index: 2, kind: input, shape index: {}]   ;;  %s2634_s3 = inlined_call_operand.hbm [shape: f32[1,512], index: 3, kind: input, shape index: {}]   ;;  %s2635_s4 = inlined_call_operand.<no memory space> [shape: f32[1,1], index: 4, kind: input, shape index: {}]   ;;  %s2636_s5 = inlined_call_operand.vmem [shape: f32[2,1], index: 5, kind: output, shape index: {}]  }
   0x1   :  { %v10_v0 = vstv %s2635_s4 }
   0x2   :  { %11 = vst [vmem:[#allocation3] sm:$0x1] %v10_v0 }
   0x3   :  { %12 = vsyncpa [#allocation5], 0 }
   0x4   :  { %13 = vsyncpa [#allocation7], 0 }
   0x5   :  { %14 = vsyncpa [#allocation10], 0  ;;  %s2151_s20 = smov [#allocation6]   ;;  %s2152_s22 = smov [#allocation4]  }
   0x6   :  { %s32_s21 = sshll.u32 %s2151_s20, 4  ;;  %s20_s23 = sshll.u32 %s2152_s22, 4  ;;  %s33_s21 = int_to_ptr.vmem [resolvable:$true] %s32_s21  ;;  %s2191_s23 = int_to_ptr.vmem [resolvable:$true] %s20_s23 }
   0x7   :  { %s2057_s26 = scalar_lea.hbm %s2632_s1, 65536 }
   0x8   :  { %p2058_p0 = scmp.ne.s32.totalorder %s2632_s1, %s2057_s26  ;;  %p2061_p1 = scmp.lt.u32.totalorder %s2057_s26, %s2632_s1 }
   0xa   :  { %p2063_p2 = pnand %p2061_p1, %p2058_p0 }
   0xc   :  { %2066 = shalt.err (!%p2063_p2)
}
   0xd   :  { %s2067_s30 = scalar_lea.vmem %s33_s21, 65536  ;;  %p2072_p4 = scmp.lt.s32.totalorder %s33_s21, %s33_s21 }
   0xe   :  { %p2068_p3 = scmp.ne.s32.totalorder %s33_s21, %s2067_s30  ;;  %p2073_p5 = scmp.lt.s32.totalorder %s2067_s30, %s2067_s30 }
  0x10   :  { %p2074_p6 = por %p2073_p5, %p2072_p4 }
  0x12   :  { %p2075_p7 = pnand %p2074_p6, %p2068_p3 }
  0x14   :  { %2078 = shalt.err (!%p2075_p7)
}
  0x15   :  { %s2153_s6 = smov 512   ;;  %s2154_s7 = smov 32  }
  0x16   :  { %38 = dma.hbm_to_vmem [thread:$0]  %s2632_s1, 65536, %s33_s21, [#allocation7], %s2153_s6, %s2153_s6, %s2154_s7  }
  0x17   :  { %s2079_s12 = scalar_lea.hbm %s2631_s0, 1024 }
  0x18   :  { %p2080_p8 = scmp.ne.s32.totalorder %s2631_s0, %s2079_s12  ;;  %p2083_p9 = scmp.lt.u32.totalorder %s2079_s12, %s2631_s0 }
  0x1a   :  { %p2085_p10 = pnand %p2083_p9, %p2080_p8 }
  0x1c   :  { %2088 = shalt.err (!%p2085_p10)
}
  0x1d   :  { %s2089_s17 = scalar_lea.vmem %s2191_s23, 1024  ;;  %p2094_p12 = scmp.lt.s32.totalorder %s2191_s23, %s2191_s23 }
  0x1e   :  { %p2090_p11 = scmp.ne.s32.totalorder %s2191_s23, %s2089_s17  ;;  %p2095_p13 = scmp.lt.s32.totalorder %s2089_s17, %s2089_s17 }
  0x20   :  { %p2096_p0 = por %p2095_p13, %p2094_p12 }
  0x22   :  { %p2097_p1 = pnand %p2096_p0, %p2090_p11 }
  0x24   :  { %2100 = shalt.err (!%p2097_p1)
}
  0x25   :  { %26 = dma.hbm_to_vmem [thread:$0]  %s2631_s0, 1024, %s2191_s23, [#allocation5], %s2153_s6, %s2153_s6, %s2154_s7  }
  0x26   :  { %s2155_s19 = smov [#allocation8]   ;;  %s2156_s21 = smov [#allocation9]  }
  0x27   :  { %s45_s20 = sshll.u32 %s2155_s19, 4  ;;  %s55_s22 = sshll.u32 %s2156_s21, 4  ;;  %s46_s20 = int_to_ptr.vmem [resolvable:$true] %s45_s20  ;;  %s56_s22 = int_to_ptr.vmem [resolvable:$true] %s55_s22 }
  0x28   :  { %s2101_s26 = scalar_lea.hbm %s2633_s2, 64 }
  0x29   :  { %p2102_p2 = scmp.ne.s32.totalorder %s2633_s2, %s2101_s26  ;;  %p2105_p3 = scmp.lt.u32.totalorder %s2101_s26, %s2633_s2 }
  0x2b   :  { %p2107_p4 = pnand %p2105_p3, %p2102_p2 }
  0x2d   :  { %2110 = shalt.err (!%p2107_p4)
}
  0x2e   :  { %s2111_s0 = scalar_lea.vmem %s46_s20, 64  ;;  %p2116_p6 = scmp.lt.s32.totalorder %s46_s20, %s46_s20 }
  0x2f   :  { %p2112_p5 = scmp.ne.s32.totalorder %s46_s20, %s2111_s0  ;;  %p2117_p7 = scmp.lt.s32.totalorder %s2111_s0, %s2111_s0 }
  0x31   :  { %p2118_p8 = por %p2117_p7, %p2116_p6 }
  0x33   :  { %p2119_p9 = pnand %p2118_p8, %p2112_p5 }
  0x35   :  { %2122 = shalt.err (!%p2119_p9)
}
  0x36   :  { %48 = dma.hbm_to_vmem [thread:$0]  %s2633_s2, 64, %s46_s20, [#allocation7]  }
  0x37   :  { %s2123_s8 = scalar_lea.hbm %s2634_s3, 64 }
  0x38   :  { %p2124_p10 = scmp.ne.s32.totalorder %s2634_s3, %s2123_s8  ;;  %p2127_p11 = scmp.lt.u32.totalorder %s2123_s8, %s2634_s3 }
  0x3a   :  { %p2129_p12 = pnand %p2127_p11, %p2124_p10 }
  0x3c   :  { %2132 = shalt.err (!%p2129_p12)
}
  0x3d   :  { %s2133_s13 = scalar_lea.vmem %s56_s22, 64  ;;  %p2138_p0 = scmp.lt.s32.totalorder %s56_s22, %s56_s22 }
  0x3e   :  { %p2134_p13 = scmp.ne.s32.totalorder %s56_s22, %s2133_s13  ;;  %p2139_p1 = scmp.lt.s32.totalorder %s2133_s13, %s2133_s13 }
  0x40   :  { %p2140_p2 = por %p2139_p1, %p2138_p0 }
  0x42   :  { %p2141_p3 = pnand %p2140_p2, %p2134_p13 }
  0x44   :  { %2144 = shalt.err (!%p2141_p3)
}
  0x45   :  { %58 = dma.hbm_to_vmem [thread:$0]  %s2634_s3, 64, %s56_s22, [#allocation10]  }
  0x46   :  { %2145 = dma.done.wait [#allocation5], 1024  }
  0x47   :  { %2146 = vsyncadd [#allocation5], 4294966272 }
  0x48   :  { %2147 = dma.done.wait [#allocation7], 65600  }
  0x49   :  { %2148 = vsyncadd [#allocation7], 4294901696 }
  0x4a   :  { %2149 = dma.done.wait [#allocation10], 64  }
  0x4b   :  { %2150 = vsyncadd [#allocation10], 4294967232  ;;  %v319_v1 = vld [vmem:[#allocation6 + $0x8] sm:$0xff]  ;;  %v321_v3 = vld [vmem:[#allocation6 + $0x18] sm:$0xff]  ;;  %vm290_vm0 = vcmask 1041409   ;;  %vm292_vm1 = vcmask 1043459  }
  0x4c   :  { %v323_v2 = vld [vmem:[#allocation6 + $0x28] sm:$0xff]  ;;  %v325_v5 = vld [vmem:[#allocation6 + $0x38] sm:$0xff]  ;;  %v318_v6 = vld [vmem:[#allocation6] sm:$0xff]  ;;  %vm294_vm2 = vcmask 1045509   ;;  %vm296_vm3 = vcmask 1047559   ;;  %vm1494_vm4 = vcmask 1041408  }
  0x4d   :  { %v1522_v4 = vpack.c.bf16 %v323_v2, %v319_v1  ;;  %v322_v7 = vld [vmem:[#allocation6 + $0x20] sm:$0xff]  ;;  %v1778_v8 = vpack.c.bf16 %v325_v5, %v321_v3  ;;  %v320_v10 = vld [vmem:[#allocation6 + $0x10] sm:$0xff]  ;;  %v327_v12 = vld [vmem:[#allocation6 + $0x48] sm:$0xff]  ;;  %vm1512_vm5 = vcmask 1024  }
  0x4e   :  { %v1524_v9 = vpack.c.bf16 %v322_v7, %v318_v6  ;;  %v324_v11 = vld [vmem:[#allocation6 + $0x30] sm:$0xff]  ;;  %v331_v14 = vld [vmem:[#allocation6 + $0x68] sm:$0xff]  ;;  %v329_v15 = vld [vmem:[#allocation6 + $0x58] sm:$0xff] }
  0x4f   :  { %1523 = vmatprep.subr.bf16.mxu0 %v1522_v4  ;;  %v1780_v13 = vpack.c.bf16 %v324_v11, %v320_v10  ;;  %v333_v16 = vld [vmem:[#allocation6 + $0x78] sm:$0xff]  ;;  %1779 = vmatprep.subr.bf16.mxu1 %v1778_v8  ;;  %v1526_v17 = vpack.c.bf16 %v331_v14, %v327_v12  ;;  %v326_v19 = vld [vmem:[#allocation6 + $0x40] sm:$0xff]  ;;  %v328_v21 = vld [vmem:[#allocation6 + $0x50] sm:$0xff] }
  0x50   :  { %1525 = vmatpush1.bf16.msra.mxu0 %v1524_v9  ;;  %v1782_v18 = vpack.c.bf16 %v333_v16, %v329_v15  ;;  %v330_v20 = vld [vmem:[#allocation6 + $0x60] sm:$0xff]  ;;  %v332_v23 = vld [vmem:[#allocation6 + $0x70] sm:$0xff]  ;;  %v335_v24 = vld [vmem:[#allocation6 + $0x88] sm:$0xff] }
  0x51   :  { %1781 = vmatpush1.bf16.msra.mxu1 %v1780_v13  ;;  %v1528_v22 = vpack.c.bf16 %v330_v20, %v326_v19  ;;  %v339_v25 = vld [vmem:[#allocation6 + $0xa8] sm:$0xff]  ;;  %1527 = vmatprep.subr.bf16.mxu0 %v1526_v17  ;;  %v1784_v26 = vpack.c.bf16 %v332_v23, %v328_v21  ;;  %v337_v28 = vld [vmem:[#allocation6 + $0x98] sm:$0xff]  ;;  %v334_v30 = vld [vmem:[#allocation6 + $0x80] sm:$0xff] }
  0x52   :  { %1783 = vmatprep.subr.bf16.mxu1 %v1782_v18  ;;  %v1530_v27 = vpack.c.bf16 %v339_v25, %v335_v24  ;;  %v341_v29 = vld [vmem:[#allocation6 + $0xb8] sm:$0xff]  ;;  %v338_v32 = vld [vmem:[#allocation6 + $0xa0] sm:$0xff]  ;;  %v336_v33 = vld [vmem:[#allocation6 + $0x90] sm:$0xff] }
  0x53   :  { %v1786_v31 = vpack.c.bf16 %v341_v29, %v337_v28  ;;  %v340_v34 = vld [vmem:[#allocation6 + $0xb0] sm:$0xff]  ;;  %v1532_v35 = vpack.c.bf16 %v338_v32, %v334_v30  ;;  %v343_v36 = vld [vmem:[#allocation6 + $0xc8] sm:$0xff]  ;;  %v345_v38 = vld [vmem:[#allocation6 + $0xd8] sm:$0xff] }
  0x54   :  { %1529 = vmatpush1.bf16.msra.mxu0 %v1528_v22  ;;  %v347_v37 = vld [vmem:[#allocation6 + $0xe8] sm:$0xff]  ;;  %v1788_v39 = vpack.c.bf16 %v340_v34, %v336_v33  ;;  %v349_v41 = vld [vmem:[#allocation6 + $0xf8] sm:$0xff]  ;;  %v342_v42 = vld [vmem:[#allocation6 + $0xc0] sm:$0xff] }
  0x55   :  { %1785 = vmatpush1.bf16.msra.mxu1 %v1784_v26  ;;  %1531 = vmatprep.subr.bf16.mxu0 %v1530_v27  ;;  %v1534_v40 = vpack.c.bf16 %v347_v37, %v343_v36  ;;  %v346_v43 = vld [vmem:[#allocation6 + $0xe0] sm:$0xff]  ;;  %v1790_v44 = vpack.c.bf16 %v349_v41, %v345_v38  ;;  %v344_v45 = vld [vmem:[#allocation6 + $0xd0] sm:$0xff]  ;;  %v351_v47 = vld [vmem:[#allocation6 + $0x108] sm:$0xff] }
  0x56   :  { %1787 = vmatprep.subr.bf16.mxu1 %v1786_v31  ;;  %v348_v46 = vld [vmem:[#allocation6 + $0xf0] sm:$0xff]  ;;  %v355_v48 = vld [vmem:[#allocation6 + $0x128] sm:$0xff]  ;;  %v353_v49 = vld [vmem:[#allocation6 + $0x118] sm:$0xff]  ;;  %v1536_v51 = vpack.c.bf16 %v346_v43, %v342_v42 }
  0x57   :  { %v357_v50 = vld [vmem:[#allocation6 + $0x138] sm:$0xff]  ;;  %v1792_v52 = vpack.c.bf16 %v348_v46, %v344_v45  ;;  %v1538_v53 = vpack.c.bf16 %v355_v48, %v351_v47  ;;  %v350_v54 = vld [vmem:[#allocation6 + $0x100] sm:$0xff]  ;;  %v352_v56 = vld [vmem:[#allocation6 + $0x110] sm:$0xff]  ;;  %v2157_v46 = vmov 1983009808   ;;  %v222_v48 = vlaneseq }
  0x58   :  { %1533 = vmatpush1.bf16.msra.mxu0 %v1532_v35  ;;  %v354_v55 = vld [vmem:[#allocation6 + $0x120] sm:$0xff]  ;;  %v1794_v57 = vpack.c.bf16 %v357_v50, %v353_v49  ;;  %v356_v58 = vld [vmem:[#allocation6 + $0x130] sm:$0xff]  ;;  %v359_v59 = vld [vmem:[#allocation6 + $0x148] sm:$0xff]  ;;  %v2246_v47 = vunpack.c.l.s4 %v2157_v46 }
  0x59   :  { %1789 = vmatpush1.bf16.msra.mxu1 %v1788_v39  ;;  %1535 = vmatprep.subr.bf16.mxu0 %v1534_v40  ;;  %v363_v60 = vld [vmem:[#allocation6 + $0x168] sm:$0xff]  ;;  %v361_v61 = vld [vmem:[#allocation6 + $0x158] sm:$0xff]  ;;  %v1540_v63 = vpack.c.bf16 %v354_v55, %v350_v54  ;;  %v1796_v0 = vpack.c.bf16 %v356_v58, %v352_v56  ;;  %v358_v2 = vld [vmem:[#allocation6 + $0x140] sm:$0xff] }
  0x5a   :  { %1791 = vmatprep.subr.bf16.mxu1 %v1790_v44  ;;  %v365_v62 = vld [vmem:[#allocation6 + $0x178] sm:$0xff]  ;;  %v1542_v1 = vpack.c.bf16 %v363_v60, %v359_v59  ;;  %v362_v3 = vld [vmem:[#allocation6 + $0x160] sm:$0xff]  ;;  %v360_v4 = vld [vmem:[#allocation6 + $0x150] sm:$0xff] }
  0x5b   :  { %v1798_v5 = vpack.c.bf16 %v365_v62, %v361_v61  ;;  %v364_v6 = vld [vmem:[#allocation6 + $0x170] sm:$0xff]  ;;  %v367_v7 = vld [vmem:[#allocation6 + $0x188] sm:$0xff]  ;;  %v369_v9 = vld [vmem:[#allocation6 + $0x198] sm:$0xff]  ;;  %v1544_v11 = vpack.c.bf16 %v362_v3, %v358_v2 }
  0x5c   :  { %1537 = vmatpush1.bf16.msra.mxu0 %v1536_v51  ;;  %v371_v8 = vld [vmem:[#allocation6 + $0x1a8] sm:$0xff]  ;;  %v373_v10 = vld [vmem:[#allocation6 + $0x1b8] sm:$0xff]  ;;  %v1800_v12 = vpack.c.bf16 %v364_v6, %v360_v4  ;;  %v366_v14 = vld [vmem:[#allocation6 + $0x180] sm:$0xff] }
  0x5d   :  { %1793 = vmatpush1.bf16.msra.mxu1 %v1792_v52  ;;  %1539 = vmatprep.subr.bf16.mxu0 %v1538_v53  ;;  %v1546_v13 = vpack.c.bf16 %v371_v8, %v367_v7  ;;  %v370_v15 = vld [vmem:[#allocation6 + $0x1a0] sm:$0xff]  ;;  %v368_v16 = vld [vmem:[#allocation6 + $0x190] sm:$0xff]  ;;  %v1802_v17 = vpack.c.bf16 %v373_v10, %v369_v9  ;;  %v375_v19 = vld [vmem:[#allocation6 + $0x1c8] sm:$0xff]  ;;  %v221_v10 = vunpack.c.0.s8 %v2246_v47 }
  0x5e   :  { %1795 = vmatprep.subr.bf16.mxu1 %v1794_v57  ;;  %v372_v18 = vld [vmem:[#allocation6 + $0x1b0] sm:$0xff]  ;;  %v379_v20 = vld [vmem:[#allocation6 + $0x1e8] sm:$0xff]  ;;  %v377_v21 = vld [vmem:[#allocation6 + $0x1d8] sm:$0xff]  ;;  %v1548_v23 = vpack.c.bf16 %v370_v15, %v366_v14 }
  0x5f   :  { %v381_v22 = vld [vmem:[#allocation6 + $0x1f8] sm:$0xff]  ;;  %v1804_v24 = vpack.c.bf16 %v372_v18, %v368_v16  ;;  %v1550_v25 = vpack.c.bf16 %v379_v20, %v375_v19  ;;  %v374_v26 = vld [vmem:[#allocation6 + $0x1c0] sm:$0xff]  ;;  %v376_v28 = vld [vmem:[#allocation6 + $0x1d0] sm:$0xff] }
  0x60   :  { %1541 = vmatpush1.bf16.msra.mxu0 %v1540_v63  ;;  %v378_v27 = vld [vmem:[#allocation6 + $0x1e0] sm:$0xff]  ;;  %v1806_v29 = vpack.c.bf16 %v381_v22, %v377_v21  ;;  %v380_v30 = vld [vmem:[#allocation6 + $0x1f0] sm:$0xff]  ;;  %v383_v31 = vld [vmem:[#allocation6 + $0x208] sm:$0xff] }
  0x61   :  { %1797 = vmatpush1.bf16.msra.mxu1 %v1796_v0  ;;  %1543 = vmatprep.subr.bf16.mxu0 %v1542_v1  ;;  %v387_v32 = vld [vmem:[#allocation6 + $0x228] sm:$0xff]  ;;  %v385_v33 = vld [vmem:[#allocation6 + $0x218] sm:$0xff]  ;;  %v1552_v35 = vpack.c.bf16 %v378_v27, %v374_v26  ;;  %v382_v36 = vld [vmem:[#allocation6 + $0x200] sm:$0xff]  ;;  %v1808_v37 = vpack.c.bf16 %v380_v30, %v376_v28 }
  0x62   :  { %1799 = vmatprep.subr.bf16.mxu1 %v1798_v5  ;;  %v389_v34 = vld [vmem:[#allocation6 + $0x238] sm:$0xff]  ;;  %v1554_v38 = vpack.c.bf16 %v387_v32, %v383_v31  ;;  %v386_v39 = vld [vmem:[#allocation6 + $0x220] sm:$0xff]  ;;  %v384_v40 = vld [vmem:[#allocation6 + $0x210] sm:$0xff] }
  0x63   :  { %v388_v41 = vld [vmem:[#allocation6 + $0x230] sm:$0xff]  ;;  %v1810_v42 = vpack.c.bf16 %v389_v34, %v385_v33  ;;  %v391_v43 = vld [vmem:[#allocation6 + $0x248] sm:$0xff]  ;;  %v393_v45 = vld [vmem:[#allocation6 + $0x258] sm:$0xff]  ;;  %v1556_v52 = vpack.c.bf16 %v386_v39, %v382_v36 }
  0x64   :  { %1545 = vmatpush1.bf16.msra.mxu0 %v1544_v11  ;;  %v395_v44 = vld [vmem:[#allocation6 + $0x268] sm:$0xff]  ;;  %v397_v49 = vld [vmem:[#allocation6 + $0x278] sm:$0xff]  ;;  %v2248_v50 = vld [vmem:[#allocation6 + $0x240] sm:$0xff]  ;;  %v1812_v57 = vpack.c.bf16 %v388_v41, %v384_v40  ;;  %v2289_v11 = vshrl.u32 %v222_v48, 7 }
  0x65   :  { %1801 = vmatpush1.bf16.msra.mxu1 %v1800_v12  ;;  %1547 = vmatprep.subr.bf16.mxu0 %v1546_v13  ;;  %v2250_v51 = vld [vmem:[#allocation6 + $0x260] sm:$0xff]  ;;  %v2252_v53 = vld [vmem:[#allocation6 + $0x250] sm:$0xff]  ;;  %v2256_v55 = vld [vmem:[#allocation6 + $0x288] sm:$0xff]  ;;  %v1558_v58 = vpack.c.bf16 %v395_v44, %v391_v43  ;;  %v1814_v1 = vpack.c.bf16 %v397_v49, %v393_v45 }
  0x66   :  { %1803 = vmatprep.subr.bf16.mxu1 %v1802_v17  ;;  %v2254_v54 = vld [vmem:[#allocation6 + $0x270] sm:$0xff]  ;;  %v2258_v56 = vld [vmem:[#allocation6 + $0x2a8] sm:$0xff]  ;;  %v2260_v59 = vld [vmem:[#allocation6 + $0x298] sm:$0xff]  ;;  %v1560_v20 = vpack.c.bf16 %v2250_v51, %v2248_v50 }
  0x67   :  { %v2262_v60 = vld [vmem:[#allocation6 + $0x2b8] sm:$0xff]  ;;  %v2264_v61 = vld [vmem:[#allocation6 + $0x280] sm:$0xff]  ;;  %v2268_v63 = vld [vmem:[#allocation6 + $0x290] sm:$0xff]  ;;  %v1816_v27 = vpack.c.bf16 %v2254_v54, %v2252_v53  ;;  %v1562_v28 = vpack.c.bf16 %v2258_v56, %v2256_v55 }
  0x68   :  { %1549 = vmatpush1.bf16.msra.mxu0 %v1548_v23  ;;  %v2266_v62 = vld [vmem:[#allocation6 + $0x2a0] sm:$0xff]  ;;  %v2270_v0 = vld [vmem:[#allocation6 + $0x2b0] sm:$0xff]  ;;  %v2272_v2 = vld [vmem:[#allocation6 + $0x2c8] sm:$0xff]  ;;  %v1818_v32 = vpack.c.bf16 %v2262_v60, %v2260_v59 }
  0x69   :  { %1805 = vmatpush1.bf16.msra.mxu1 %v1804_v24  ;;  %1551 = vmatprep.subr.bf16.mxu0 %v1550_v25  ;;  %v2274_v3 = vld [vmem:[#allocation6 + $0x2e8] sm:$0xff]  ;;  %v2276_v4 = vld [vmem:[#allocation6 + $0x2d8] sm:$0xff]  ;;  %v2280_v6 = vld [vmem:[#allocation6 + $0x2c0] sm:$0xff]  ;;  %v1564_v33 = vpack.c.bf16 %v2266_v62, %v2264_v61  ;;  %v1820_v34 = vpack.c.bf16 %v2270_v0, %v2268_v63 }
  0x6a   :  { %1807 = vmatprep.subr.bf16.mxu1 %v1806_v29  ;;  %v2278_v5 = vld [vmem:[#allocation6 + $0x2f8] sm:$0xff]  ;;  %v2282_v7 = vld [vmem:[#allocation6 + $0x2e0] sm:$0xff]  ;;  %v2284_v8 = vld [vmem:[#allocation6 + $0x2d0] sm:$0xff]  ;;  %v1566_v39 = vpack.c.bf16 %v2274_v3, %v2272_v2 }
  0x6b   :  { %v2286_v9 = vld [vmem:[#allocation6 + $0x2f0] sm:$0xff]  ;;  %v2291_v12 = vld [vmem:[#allocation6 + $0x308] sm:$0xff]  ;;  %v2295_v14 = vld [vmem:[#allocation6 + $0x318] sm:$0xff]  ;;  %v1822_v40 = vpack.c.bf16 %v2278_v5, %v2276_v4  ;;  %v1568_v41 = vpack.c.bf16 %v2282_v7, %v2280_v6 }
  0x6c   :  { %1553 = vmatpush1.bf16.msra.mxu0 %v1552_v35  ;;  %v2293_v13 = vld [vmem:[#allocation6 + $0x328] sm:$0xff]  ;;  %v2297_v15 = vld [vmem:[#allocation6 + $0x338] sm:$0xff]  ;;  %v2299_v16 = vld [vmem:[#allocation6 + $0x300] sm:$0xff] }
  0x6d   :  { %1809 = vmatpush1.bf16.msra.mxu1 %v1808_v37  ;;  %1555 = vmatprep.subr.bf16.mxu0 %v1554_v38  ;;  %v2301_v17 = vld [vmem:[#allocation6 + $0x320] sm:$0xff]  ;;  %v2303_v18 = vld [vmem:[#allocation6 + $0x310] sm:$0xff]  ;;  %v2309_v21 = vld [vmem:[#allocation6 + $0x348] sm:$0xff]  ;;  %v2344_v38 = vsub.s32 %v221_v10, %v2289_v11  ;;  %v1570_v46 = vpack.c.bf16 %v2293_v13, %v2291_v12  ;;  %v1826_v47 = vpack.c.bf16 %v2297_v15, %v2295_v14 }
  0x6e   :  { %1811 = vmatprep.subr.bf16.mxu1 %v1810_v42  ;;  %v2305_v19 = vld [vmem:[#allocation6 + $0x330] sm:$0xff]  ;;  %v2311_v22 = vld [vmem:[#allocation6 + $0x368] sm:$0xff]  ;;  %v2313_v23 = vld [vmem:[#allocation6 + $0x358] sm:$0xff]  ;;  %v1824_v42 = vpack.c.bf16 %v2286_v9, %v2284_v8  ;;  %v1572_v48 = vpack.c.bf16 %v2301_v17, %v2299_v16 }
  0x6f   :  { %v2315_v24 = vld [vmem:[#allocation6 + $0x378] sm:$0xff]  ;;  %v2317_v25 = vld [vmem:[#allocation6 + $0x340] sm:$0xff]  ;;  %v2325_v29 = vld [vmem:[#allocation6 + $0x350] sm:$0xff]  ;;  %v1828_v49 = vpack.c.bf16 %v2305_v19, %v2303_v18  ;;  %v1574_v53 = vpack.c.bf16 %v2311_v22, %v2309_v21 }
  0x70   :  { %1557 = vmatpush1.bf16.msra.mxu0 %v1556_v52  ;;  %v2319_v26 = vld [vmem:[#allocation6 + $0x360] sm:$0xff]  ;;  %v2327_v30 = vld [vmem:[#allocation6 + $0x370] sm:$0xff]  ;;  %v2329_v31 = vld [vmem:[#allocation6 + $0x388] sm:$0xff]  ;;  %v1830_v54 = vpack.c.bf16 %v2315_v24, %v2313_v23 }
  0x71   :  { %1813 = vmatpush1.bf16.msra.mxu1 %v1812_v57  ;;  %1559 = vmatprep.subr.bf16.mxu0 %v1558_v58  ;;  %v2337_v35 = vld [vmem:[#allocation6 + $0x3a8] sm:$0xff]  ;;  %v2339_v36 = vld [vmem:[#allocation6 + $0x398] sm:$0xff]  ;;  %v2354_v43 = vld [vmem:[#allocation6 + $0x380] sm:$0xff]  ;;  %v1576_v55 = vpack.c.bf16 %v2319_v26, %v2317_v25  ;;  %v1832_v56 = vpack.c.bf16 %v2327_v30, %v2325_v29 }
  0x72   :  { %1815 = vmatprep.subr.bf16.mxu1 %v1814_v1  ;;  %v2341_v37 = vld [vmem:[#allocation6 + $0x3b8] sm:$0xff]  ;;  %v2356_v44 = vld [vmem:[#allocation6 + $0x3a0] sm:$0xff]  ;;  %v2358_v45 = vld [vmem:[#allocation6 + $0x390] sm:$0xff]  ;;  %v1578_v57 = vpack.c.bf16 %v2337_v35, %v2329_v31 }
  0x73   :  { %v2368_v50 = vld [vmem:[#allocation6 + $0x3b0] sm:$0xff]  ;;  %v2370_v51 = vld [vmem:[#allocation6 + $0x3c8] sm:$0xff]  ;;  %v1834_v58 = vpack.c.bf16 %v2341_v37, %v2339_v36  ;;  %v1580_v59 = vpack.c.bf16 %v2356_v44, %v2354_v43  ;;  %v81_v60 = vld [vmem:[#allocation4] sm:$0xff] }
  0x74   :  { %1561 = vmatpush1.bf16.msra.mxu0 %v1560_v20  ;;  %v2372_v52 = vld [vmem:[#allocation6 + $0x3e8] sm:$0xff]  ;;  %v1836_v61 = vpack.c.bf16 %v2368_v50, %v2358_v45  ;;  %v85_v0 = vld [vmem:[#allocation4 + $0x20] sm:$0xff]  ;;  %v89_v2 = vunpack.c.l.bf16 %v81_v60  ;;  %v90_v3 = vunpack.c.h.bf16 %v81_v60  ;;  %v444_v26 = vld [vmem:[#allocation6 + $0x3f0] sm:$0xff] }
  0x75   :  { %1817 = vmatpush1.bf16.msra.mxu1 %v1816_v27  ;;  %1563 = vmatprep.subr.bf16.mxu0 %v1562_v28  ;;  %v82_v63 = vld [vmem:[#allocation4 + $0x8] sm:$0xff]  ;;  %v97_v6 = vunpack.c.l.bf16 %v85_v0  ;;  %v98_v7 = vunpack.c.h.bf16 %v85_v0  ;;  %v438_v23 = vld [vmem:[#allocation6 + $0x3c0] sm:$0xff]  ;;  %v449_v35 = vld [vmem:[#allocation6 + $0x418] sm:$0xff]  ;;  %v2637_v37 = vpack.c.bf16 %v2372_v52, %v2370_v51 }
  0x76   :  { %1819 = vmatprep.subr.bf16.mxu1 %v1818_v32  ;;  %v86_v1 = vld [vmem:[#allocation4 + $0x28] sm:$0xff]  ;;  %v91_v4 = vunpack.c.l.bf16 %v82_v63  ;;  %v92_v5 = vunpack.c.h.bf16 %v82_v63  ;;  %v105_v10 = vrot.slane %v89_v2, 4  ;;  %v111_v12 = vrot.slane %v90_v3, 4  ;;  %v442_v24 = vld [vmem:[#allocation6 + $0x3e0] sm:$0xff] }
  0x77   :  { %v99_v8 = vunpack.c.l.bf16 %v86_v1  ;;  %v100_v9 = vunpack.c.h.bf16 %v86_v1  ;;  %v153_v15 = vrot.slane %v97_v6, 4  ;;  %v159_v16 = vrot.slane %v98_v7, 4  ;;  %v447_v29 = vld [vmem:[#allocation6 + $0x408] sm:$0xff] }
  0x78   :  { %1565 = vmatpush1.bf16.msra.mxu0 %v1564_v33  ;;  %v117_v13 = vrot.slane %v91_v4, 4  ;;  %v123_v14 = vrot.slane %v92_v5, 4  ;;  %v106_v17 = vadd.f32 %v105_v10, %v89_v2  ;;  %v112_v20 = vadd.f32 %v111_v12, %v90_v3  ;;  %v451_v30 = vld [vmem:[#allocation6 + $0x428] sm:$0xff] }
  0x79   :  { %1821 = vmatpush1.bf16.msra.mxu1 %v1820_v34  ;;  %1567 = vmatprep.subr.bf16.mxu0 %v1566_v39  ;;  %v165_v21 = vrot.slane %v99_v8, 4  ;;  %v171_v22 = vrot.slane %v100_v9, 4  ;;  %v154_v32 = vadd.f32 %v153_v15, %v97_v6  ;;  %v160_v33 = vadd.f32 %v159_v16, %v98_v7  ;;  %v445_v15 = vld [vmem:[#allocation6 + $0x3f8] sm:$0xff] }
  0x7a   :  { %1823 = vmatprep.subr.bf16.mxu1 %v1822_v40  ;;  %v118_v27 = vadd.f32 %v117_v13, %v91_v4  ;;  %v124_v28 = vadd.f32 %v123_v14, %v92_v5  ;;  %v107_v34 = vrot.slane %v106_v17, 2  ;;  %v113_v39 = vrot.slane %v112_v20, 2  ;;  %v441_v14 = vld [vmem:[#allocation6 + $0x3d8] sm:$0xff] }
  0x7b   :  { %v166_v60 = vadd.f32 %v165_v21, %v99_v8  ;;  %v172_v63 = vadd.f32 %v171_v22, %v100_v9  ;;  %v155_v1 = vrot.slane %v154_v32, 2  ;;  %v161_v62 = vrot.slane %v160_v33, 2 }
  0x7c   :  { %1569 = vmatpush1.bf16.msra.mxu0 %v1568_v41  ;;  %v119_v40 = vrot.slane %v118_v27, 2  ;;  %v125_v0 = vrot.slane %v124_v28, 2  ;;  %v108_v2 = vadd.f32 %v107_v34, %v106_v17  ;;  %v114_v3 = vadd.f32 %v113_v39, %v112_v20 }
  0x7d   :  { %1825 = vmatpush1.bf16.msra.mxu1 %v1824_v42  ;;  %1571 = vmatprep.subr.bf16.mxu0 %v1570_v46  ;;  %v167_v10 = vrot.slane %v166_v60, 2  ;;  %v173_v12 = vrot.slane %v172_v63, 2  ;;  %v156_v5 = vadd.f32 %v155_v1, %v154_v32  ;;  %v162_v6 = vadd.f32 %v161_v62, %v160_v33  ;;  %v452_v1 = vld [vmem:[#allocation6 + $0x430] sm:$0xff] }
  0x7e   :  { %1827 = vmatprep.subr.bf16.mxu1 %v1826_v47  ;;  %v120_v41 = vadd.f32 %v119_v40, %v118_v27  ;;  %v126_v4 = vadd.f32 %v125_v0, %v124_v28  ;;  %v109_v42 = vrot.slane %v108_v2, 1  ;;  %v115_v46 = vrot.slane %v114_v3, 1  ;;  %v450_v40 = vld [vmem:[#allocation6 + $0x420] sm:$0xff]  ;;  %v448_v0 = vld [vmem:[#allocation6 + $0x410] sm:$0xff] }
  0x7f   :  { %v168_v47 = vadd.f32 %v167_v10, %v166_v60  ;;  %v174_v7 = vadd.f32 %v173_v12, %v172_v63  ;;  %v163_v13 = vrot.slane %v162_v6, 1  ;;  %v1838_v25 = vpack.c.bf16 %v445_v15, %v441_v14  ;;  %v446_v63 = vld [vmem:[#allocation6 + $0x400] sm:$0xff]  ;;  %v459_v12 = vld [vmem:[#allocation6 + $0x468] sm:$0xff] }
  0x80   :  { %1573 = vmatpush1.bf16.msra.mxu0 %v1572_v48  ;;  %v121_v8 = vrot.slane %v120_v41, 1  ;;  %v127_v9 = vrot.slane %v126_v4, 1  ;;  %v157_v48 = vrot.slane %v156_v5, 1  ;;  %v110_v62 = vadd.f32 %v109_v42, %v108_v2  ;;  %v455_v2 = vld [vmem:[#allocation6 + $0x448] sm:$0xff] }
  0x81   :  { %1829 = vmatpush1.bf16.msra.mxu1 %v1828_v49  ;;  %1575 = vmatprep.subr.bf16.mxu0 %v1574_v53  ;;  %v116_v16 = vadd.f32 %v115_v46, %v114_v3  ;;  %v169_v17 = vrot.slane %v168_v47, 1  ;;  %v175_v18 = vrot.slane %v174_v7, 1  ;;  %v164_v20 = vadd.f32 %v163_v13, %v162_v6  ;;  %v454_v46 = vld [vmem:[#allocation6 + $0x440] sm:$0xff]  ;;  %v460_v13 = vld [vmem:[#allocation6 + $0x470] sm:$0xff]  ;;  %v463_v14 = vld [vmem:[#allocation6 + $0x488] sm:$0xff] }
  0x82   :  { %1831 = vmatprep.subr.bf16.mxu1 %v1830_v54  ;;  %v122_v19 = vadd.f32 %v121_v8, %v120_v41  ;;  %v128_v49 = vadd.f32 %v127_v9, %v126_v4  ;;  %v158_v53 = vadd.f32 %v157_v48, %v156_v5  ;;  %v440_v54 = vld [vmem:[#allocation6 + $0x3d0] sm:$0xff]  ;;  %v1584_v32 = vpack.c.bf16 %v442_v24, %v438_v23  ;;  %v457_v41 = vld [vmem:[#allocation6 + $0x458] sm:$0xff]  ;;  %v467_v15 = vld [vmem:[#allocation6 + $0x4a8] sm:$0xff] }
  0x83   :  { %v170_v21 = vadd.f32 %v169_v17, %v168_v47  ;;  %v176_v22 = vadd.f32 %v175_v18, %v174_v7  ;;  %v217_v27 = vcombine.low %v110_v62, %v116_v16  ;;  %v1586_v39 = vpack.c.bf16 %v451_v30, %v447_v29  ;;  %v461_v4 = vld [vmem:[#allocation6 + $0x478] sm:$0xff]  ;;  %v458_v47 = vld [vmem:[#allocation6 + $0x460] sm:$0xff]  ;;  %v456_v48 = vld [vmem:[#allocation6 + $0x450] sm:$0xff] }
  0x84   :  { %1577 = vmatpush1.bf16.msra.mxu0 %v1576_v55  ;;  %v218_v55 = vcombine.low %v122_v19, %v128_v49  ;;  %v251_v28 = vcombine.low %v158_v53, %v164_v20  ;;  %v1588_v6 = vpack.c.bf16 %v450_v40, %v446_v63  ;;  %v1844_v42 = vpack.c.bf16 %v452_v1, %v448_v0  ;;  %v465_v62 = vld [vmem:[#allocation6 + $0x498] sm:$0xff]  ;;  %v462_v49 = vld [vmem:[#allocation6 + $0x480] sm:$0xff]  ;;  %v464_v24 = vld [vmem:[#allocation6 + $0x490] sm:$0xff] }
  0x85   :  { %1833 = vmatpush1.bf16.msra.mxu1 %v1832_v56  ;;  %1579 = vmatprep.subr.bf16.mxu0 %v1578_v57  ;;  %v225_v56 = vrot.slane %v217_v27, %v2344_v38  ;;  %v252_v31 = vcombine.low %v170_v21, %v176_v22  ;;  %v453_v57 = vld [vmem:[#allocation6 + $0x438] sm:$0xff]  ;;  %v1590_v8 = vpack.c.bf16 %v459_v12, %v455_v2  ;;  %v466_v53 = vld [vmem:[#allocation6 + $0x4a0] sm:$0xff]  ;;  %v471_v21 = vld [vmem:[#allocation6 + $0x4c8] sm:$0xff] }
  0x86   :  { %1835 = vmatprep.subr.bf16.mxu1 %v1834_v58  ;;  %v232_v33 = vrot.slane %v218_v55, %v2344_v38  ;;  %v259_v36 = vrot.slane %v251_v28, %v2344_v38  ;;  %v1840_v58 = vpack.c.bf16 %v444_v26, %v440_v54  ;;  %v1842_v43 = vpack.c.bf16 %v453_v57, %v449_v35  ;;  %v469_v16 = vld [vmem:[#allocation6 + $0x4b8] sm:$0xff]  ;;  %v468_v54 = vld [vmem:[#allocation6 + $0x4b0] sm:$0xff]  ;;  %v475_v22 = vld [vmem:[#allocation6 + $0x4e8] sm:$0xff] }
  0x87   :  { %v266_v34 = vrot.slane %v252_v31, %v2344_v38  ;;  %v1846_v9 = vpack.c.bf16 %v461_v4, %v457_v41  ;;  %v1592_v18 = vpack.c.bf16 %v458_v47, %v454_v46  ;;  %v1848_v19 = vpack.c.bf16 %v460_v13, %v456_v48  ;;  %v473_v27 = vld [vmem:[#allocation6 + $0x4d8] sm:$0xff]  ;;  %v470_v28 = vld [vmem:[#allocation6 + $0x4c0] sm:$0xff]  ;;  %v472_v31 = vld [vmem:[#allocation6 + $0x4d0] sm:$0xff] }
  0x88   :  { %1581 = vmatpush1.bf16.msra.mxu0 %v1580_v59  ;;  %v233_v44 = vcombine.low %v225_v56, %v232_v33  ;;  %v1594_v20 = vpack.c.bf16 %v467_v15, %v463_v14  ;;  %v1850_v23 = vpack.c.bf16 %v469_v16, %v465_v62  ;;  %v1596_v26 = vpack.c.bf16 %v466_v53, %v462_v49  ;;  %v474_v29 = vld [vmem:[#allocation6 + $0x4e0] sm:$0xff]  ;;  %v476_v35 = vld [vmem:[#allocation6 + $0x4f0] sm:$0xff]  ;;  %v479_v57 = vld [vmem:[#allocation6 + $0x508] sm:$0xff] }
  0x89   :  { %1837 = vmatpush1.bf16.msra.mxu1 %v1836_v61  ;;  %1583 = vmatprep.subr.bf16.mxu0 %v2637_v37  ;;  %v267_v59 = vcombine.low %v259_v36, %v266_v34  ;;  %v1852_v55 = vpack.c.bf16 %v468_v54, %v464_v24  ;;  %v1598_v30 = vpack.c.bf16 %v475_v22, %v471_v21  ;;  %v481_v33 = vld [vmem:[#allocation6 + $0x518] sm:$0xff]  ;;  %v478_v34 = vld [vmem:[#allocation6 + $0x500] sm:$0xff]  ;;  %v495_v12 = vld [vmem:[#allocation6 + $0x588] sm:$0xff] }
  0x8a   :  { %1839 = vmatprep.subr.bf16.mxu1 %v1838_v25  ;;  %v477_v25 = vld [vmem:[#allocation6 + $0x4f8] sm:$0xff]  ;;  %v1600_v37 = vpack.c.bf16 %v474_v29, %v470_v28  ;;  %v486_v40 = vld [vmem:[#allocation6 + $0x540] sm:$0xff]  ;;  %v499_v41 = vld [vmem:[#allocation6 + $0x5a8] sm:$0xff] }
  0x8b   :  { %v289_v60 = vrot.slane %v267_v59, 7  ;;  %v1854_v56 = vpack.c.bf16 %v477_v25, %v473_v27  ;;  %v485_v36 = vld [vmem:[#allocation6 + $0x538] sm:$0xff]  ;;  %v480_v59 = vld [vmem:[#allocation6 + $0x510] sm:$0xff]  ;;  %v490_v0 = vld [vmem:[#allocation6 + $0x560] sm:$0xff] }
  0x8c   :  { %1585 = vmatpush1.bf16.msra.mxu0 %v1584_v32  ;;  %v483_v32 = vld [vmem:[#allocation6 + $0x528] sm:$0xff]  ;;  %v497_v4 = vld [vmem:[#allocation6 + $0x598] sm:$0xff]  ;;  %v494_v46 = vld [vmem:[#allocation6 + $0x580] sm:$0xff] }
  0x8d   :  { %1841 = vmatpush1.bf16.msra.mxu1 %v1840_v58  ;;  %1587 = vmatprep.subr.bf16.mxu0 %v1586_v39  ;;  %v291_v45 = vsel %vm290_vm0, %v289_v60, %v233_v44  ;;  %v1856_v58 = vpack.c.bf16 %v476_v35, %v472_v31  ;;  %v482_v39 = vld [vmem:[#allocation6 + $0x520] sm:$0xff]  ;;  %v1858_v44 = vpack.c.bf16 %v485_v36, %v481_v33  ;;  %v496_v48 = vld [vmem:[#allocation6 + $0x590] sm:$0xff]  ;;  %v503_v14 = vld [vmem:[#allocation6 + $0x5c8] sm:$0xff] }
  0x8e   :  { %1843 = vmatprep.subr.bf16.mxu1 %v1842_v43  ;;  %v293_v50 = vsel %vm292_vm1, %v289_v60, %v291_v45  ;;  %v1602_v43 = vpack.c.bf16 %v483_v32, %v479_v57  ;;  %v487_v45 = vld [vmem:[#allocation6 + $0x548] sm:$0xff]  ;;  %v498_v47 = vld [vmem:[#allocation6 + $0x5a0] sm:$0xff]  ;;  %v500_v13 = vld [vmem:[#allocation6 + $0x5b0] sm:$0xff] }
  0x8f   :  { %v295_v51 = vsel %vm294_vm2, %v289_v60, %v293_v50  ;;  %v491_v50 = vld [vmem:[#allocation6 + $0x568] sm:$0xff]  ;;  %v505_v62 = vld [vmem:[#allocation6 + $0x5d8] sm:$0xff]  ;;  %v506_v49 = vld [vmem:[#allocation6 + $0x5e0] sm:$0xff] }
  0x90   :  { %v297_v52 = vsel %vm296_vm3, %v289_v60, %v295_v51  ;;  %v484_v60 = vld [vmem:[#allocation6 + $0x530] sm:$0xff]  ;;  %v489_v51 = vld [vmem:[#allocation6 + $0x558] sm:$0xff]  ;;  %v1606_v1 = vpack.c.bf16 %v491_v50, %v487_v45  ;;  %v507_v15 = vld [vmem:[#allocation6 + $0x5e8] sm:$0xff] }
  0x91   :  { %v316_v61 = vmul.f32 0.125, %v297_v52  ;;  %v493_v52 = vld [vmem:[#allocation6 + $0x578] sm:$0xff]  ;;  %v1860_v63 = vpack.c.bf16 %v484_v60, %v480_v59  ;;  %v1614_v53 = vpack.c.bf16 %v507_v15, %v503_v14  ;;  %v508_v24 = vld [vmem:[#allocation6 + $0x5f0] sm:$0xff]  ;;  %v511_v54 = vld [vmem:[#allocation6 + $0x608] sm:$0xff] }
  0x92   :  { %v1862_v2 = vpack.c.bf16 %v493_v52, %v489_v51  ;;  %v509_v16 = vld [vmem:[#allocation6 + $0x5f8] sm:$0xff]  ;;  %v515_v21 = vld [vmem:[#allocation6 + $0x628] sm:$0xff]  ;;  %v514_v28 = vld [vmem:[#allocation6 + $0x620] sm:$0xff] }
  0x93   :  { %v854_v3 = vcombine.high %v316_v61, %v316_v61  ;;  %v861_v10 = vrot.slane %v316_v61, %v2344_v38  ;;  %v1604_v61 = vpack.c.bf16 %v482_v39, %v478_v34  ;;  %v513_v22 = vld [vmem:[#allocation6 + $0x618] sm:$0xff]  ;;  %v1618_v29 = vpack.c.bf16 %v515_v21, %v511_v54  ;;  %v516_v31 = vld [vmem:[#allocation6 + $0x630] sm:$0xff]  ;;  %v519_v35 = vld [vmem:[#allocation6 + $0x648] sm:$0xff] }
  0x94   :  { %v517_v27 = vld [vmem:[#allocation6 + $0x638] sm:$0xff]  ;;  %v523_v57 = vld [vmem:[#allocation6 + $0x668] sm:$0xff]  ;;  %v522_v34 = vld [vmem:[#allocation6 + $0x660] sm:$0xff] }
  0x95   :  { %v869_v5 = vcombine.high %v861_v10, %v861_v10  ;;  %v2429_v7 = vrot.slane %v854_v3, %v2344_v38  ;;  %v488_v3 = vld [vmem:[#allocation6 + $0x550] sm:$0xff]  ;;  %v521_v32 = vld [vmem:[#allocation6 + $0x658] sm:$0xff]  ;;  %v1622_v39 = vpack.c.bf16 %v523_v57, %v519_v35  ;;  %v527_v60 = vld [vmem:[#allocation6 + $0x688] sm:$0xff] }
  0x96   :  { %v525_v33 = vld [vmem:[#allocation6 + $0x678] sm:$0xff]  ;;  %v524_v59 = vld [vmem:[#allocation6 + $0x670] sm:$0xff]  ;;  %v531_v45 = vld [vmem:[#allocation6 + $0x6a8] sm:$0xff] }
  0x97   :  { %960 = vmatprep.mubr.f32.mxu0 %v869_v5  ;;  %1244 = vmatprep.mubr.f32.mxu1 %v869_v5  ;;  %v870_v17 = vcombine.high %v2429_v7, %v2429_v7  ;;  %v501_v5 = vld [vmem:[#allocation6 + $0x5b8] sm:$0xff]  ;;  %v547_v14 = vld [vmem:[#allocation6 + $0x728] sm:$0xff]  ;;  %v2463_v35 = vld [vmem:[#allocation6 + $0x7a0] sm:$0xff] }
  0x98   :  { %961 = vmatmul.mubr.f32.vlgmr.msra.gmra.mrb[0].mxu0 %v861_v10  ;;  %1245 = vmatmul.mubr.f32.vlgmr.msra.gmra.mrb[0].mxu1 %v861_v10  ;;  %v492_v10 = vld [vmem:[#allocation6 + $0x570] sm:$0xff]  ;;  %v529_v50 = vld [vmem:[#allocation6 + $0x698] sm:$0xff] }
  0x99   :  { %1589 = vmatpush1.bf16.msra.mxu0 %v1588_v6  ;;  %1845 = vmatpush1.bf16.msra.mxu1 %v1844_v42  ;;  %v1608_v6 = vpack.c.bf16 %v490_v0, %v486_v40  ;;  %v1864_v42 = vpack.c.bf16 %v492_v10, %v488_v3  ;;  %v533_v51 = vld [vmem:[#allocation6 + $0x6b8] sm:$0xff]  ;;  %v530_v40 = vld [vmem:[#allocation6 + $0x6a0] sm:$0xff]  ;;  %v1626_v0 = vpack.c.bf16 %v531_v45, %v527_v60  ;;  %v532_v3 = vld [vmem:[#allocation6 + $0x6b0] sm:$0xff] }
  0x9a   :  { %1591 = vmatprep.subr.bf16.mxu0 %v1590_v8  ;;  %1847 = vmatprep.subr.bf16.mxu1 %v1846_v9  ;;  %v1610_v8 = vpack.c.bf16 %v499_v41, %v495_v12  ;;  %v1866_v9 = vpack.c.bf16 %v501_v5, %v497_v4  ;;  %v535_v10 = vld [vmem:[#allocation6 + $0x6c8] sm:$0xff]  ;;  %v537_v41 = vld [vmem:[#allocation6 + $0x6d8] sm:$0xff]  ;;  %v2465_v57 = vld [vmem:[#allocation6 + $0x790] sm:$0xff] }
  0x9b   :  { %1031 = vmatprep.mubr.f32.mxu0 %v870_v17  ;;  %1315 = vmatprep.mubr.f32.mxu1 %v870_v17  ;;  %v1612_v17 = vpack.c.bf16 %v498_v47, %v494_v46  ;;  %v539_v12 = vld [vmem:[#allocation6 + $0x6e8] sm:$0xff]  ;;  %v541_v4 = vld [vmem:[#allocation6 + $0x6f8] sm:$0xff]  ;;  %v538_v46 = vld [vmem:[#allocation6 + $0x6e0] sm:$0xff] }
  0x9c   :  { %v1630_v47 = vpack.c.bf16 %v539_v12, %v535_v10  ;;  %v545_v15 = vld [vmem:[#allocation6 + $0x718] sm:$0xff]  ;;  %v2486_v60 = vld [vmem:[#allocation6 + $0x7f0] sm:$0xff]  ;;  %v2488_v45 = vld [vmem:[#allocation6 + $0x808] sm:$0xff] }
  0x9d   :  { %1593 = vmatpush1.bf16.msra.mxu0 %v1592_v18  ;;  %1849 = vmatpush1.bf16.msra.mxu1 %v1848_v19  ;;  %v1868_v18 = vpack.c.bf16 %v500_v13, %v496_v48  ;;  %v502_v19 = vld [vmem:[#allocation6 + $0x5c0] sm:$0xff]  ;;  %v540_v48 = vld [vmem:[#allocation6 + $0x6f0] sm:$0xff]  ;;  %v543_v13 = vld [vmem:[#allocation6 + $0x708] sm:$0xff] }
  0x9e   :  { %1595 = vmatprep.subr.bf16.mxu0 %v1594_v20  ;;  %1851 = vmatprep.subr.bf16.mxu1 %v1850_v23  ;;  %v1870_v20 = vpack.c.bf16 %v509_v16, %v505_v62  ;;  %v504_v23 = vld [vmem:[#allocation6 + $0x5d0] sm:$0xff]  ;;  %v1616_v25 = vpack.c.bf16 %v506_v49, %v502_v19  ;;  %v549_v62 = vld [vmem:[#allocation6 + $0x738] sm:$0xff]  ;;  %v2433_v16 = vld [vmem:[#allocation6 + $0x700] sm:$0xff]  ;;  %v1634_v54 = vpack.c.bf16 %v547_v14, %v543_v13 }
  0x9f   :  { %v548_v19 = vld [vmem:[#allocation6 + $0x730] sm:$0xff]  ;;  %v1890_v21 = vpack.c.bf16 %v549_v62, %v545_v15  ;;  %v2511_v12 = vld [vmem:[#allocation6 + $0x868] sm:$0xff] }
  0xa0   :  { %v2537_v15 = vld [vmem:[#allocation6 + $0x870] sm:$0xff]  ;;  %v2539_v62 = vld [vmem:[#allocation6 + $0x888] sm:$0xff] }
  0xa1   :  { %1597 = vmatpush1.bf16.msra.mxu0 %v1596_v26  ;;  %1853 = vmatpush1.bf16.msra.mxu1 %v1852_v55  ;;  %v1872_v26 = vpack.c.bf16 %v508_v24, %v504_v23  ;;  %v510_v55 = vld [vmem:[#allocation6 + $0x600] sm:$0xff]  ;;  %v2441_v23 = vld [vmem:[#allocation6 + $0x768] sm:$0xff]  ;;  %v2443_v24 = vld [vmem:[#allocation6 + $0x758] sm:$0xff] }
  0xa2   :  { %1599 = vmatprep.subr.bf16.mxu0 %v1598_v30  ;;  %1855 = vmatprep.subr.bf16.mxu1 %v1854_v56  ;;  %v1874_v30 = vpack.c.bf16 %v517_v27, %v513_v22  ;;  %v512_v56 = vld [vmem:[#allocation6 + $0x610] sm:$0xff]  ;;  %v1620_v36 = vpack.c.bf16 %v514_v28, %v510_v55  ;;  %v557_v22 = vld [vmem:[#allocation6 + $0x778] sm:$0xff]  ;;  %v2445_v27 = vld [vmem:[#allocation6 + $0x740] sm:$0xff] }
  0xa3   :  { %v2451_v55 = vld [vmem:[#allocation6 + $0x770] sm:$0xff]  ;;  %v2453_v28 = vld [vmem:[#allocation6 + $0x788] sm:$0xff] }
  0xa5   :  { %1601 = vmatpush1.bf16.msra.mxu0 %v1600_v37  ;;  %1857 = vmatpush1.bf16.msra.mxu1 %v1856_v58  ;;  %v1876_v37 = vpack.c.bf16 %v516_v31, %v512_v56  ;;  %v518_v58 = vld [vmem:[#allocation6 + $0x640] sm:$0xff]  ;;  %v2459_v56 = vld [vmem:[#allocation6 + $0x7b8] sm:$0xff] }
  0xa6   :  { %1603 = vmatprep.subr.bf16.mxu0 %v1602_v43  ;;  %1859 = vmatprep.subr.bf16.mxu1 %v1858_v44  ;;  %v1878_v43 = vpack.c.bf16 %v525_v33, %v521_v32  ;;  %v520_v44 = vld [vmem:[#allocation6 + $0x650] sm:$0xff]  ;;  %v1624_v52 = vpack.c.bf16 %v522_v34, %v518_v58  ;;  %v2461_v31 = vld [vmem:[#allocation6 + $0x780] sm:$0xff]  ;;  %v2469_v33 = vld [vmem:[#allocation6 + $0x7c8] sm:$0xff] }
  0xa7   :  { %v2467_v32 = vld [vmem:[#allocation6 + $0x7b0] sm:$0xff]  ;;  %v2475_v58 = vld [vmem:[#allocation6 + $0x7f8] sm:$0xff] }
  0xa9   :  { %1605 = vmatpush1.bf16.msra.mxu0 %v1604_v61  ;;  %1861 = vmatpush1.bf16.msra.mxu1 %v1860_v63  ;;  %v1880_v61 = vpack.c.bf16 %v524_v59, %v520_v44  ;;  %v526_v63 = vld [vmem:[#allocation6 + $0x680] sm:$0xff]  ;;  %v2484_v59 = vld [vmem:[#allocation6 + $0x7d0] sm:$0xff] }
  0xaa   :  { %1607 = vmatprep.subr.bf16.mxu0 %v1606_v1  ;;  %1863 = vmatprep.subr.bf16.mxu1 %v1862_v2  ;;  %v1882_v1 = vpack.c.bf16 %v533_v51, %v529_v50  ;;  %v528_v2 = vld [vmem:[#allocation6 + $0x690] sm:$0xff]  ;;  %v1628_v5 = vpack.c.bf16 %v530_v40, %v526_v63  ;;  %v2482_v44 = vld [vmem:[#allocation6 + $0x7e0] sm:$0xff]  ;;  %v2490_v50 = vld [vmem:[#allocation6 + $0x828] sm:$0xff] }
  0xab   :  { %v2497_v63 = vld [vmem:[#allocation6 + $0x838] sm:$0xff]  ;;  %v2499_v40 = vld [vmem:[#allocation6 + $0x800] sm:$0xff] }
  0xad   :  { %1609 = vmatpush1.bf16.msra.mxu0 %v1608_v6  ;;  %1865 = vmatpush1.bf16.msra.mxu1 %v1864_v42  ;;  %v1884_v6 = vpack.c.bf16 %v532_v3, %v528_v2  ;;  %v534_v42 = vld [vmem:[#allocation6 + $0x6c0] sm:$0xff]  ;;  %v2505_v2 = vld [vmem:[#allocation6 + $0x830] sm:$0xff]  ;;  %v2507_v3 = vld [vmem:[#allocation6 + $0x848] sm:$0xff] }
  0xae   :  { %1611 = vmatprep.subr.bf16.mxu0 %v1610_v8  ;;  %1867 = vmatprep.subr.bf16.mxu1 %v1866_v9  ;;  %v1886_v8 = vpack.c.bf16 %v541_v4, %v537_v41  ;;  %v536_v9 = vld [vmem:[#allocation6 + $0x6d0] sm:$0xff]  ;;  %v1632_v49 = vpack.c.bf16 %v538_v46, %v534_v42  ;;  %v2513_v41 = vld [vmem:[#allocation6 + $0x858] sm:$0xff]  ;;  %v1644_v46 = vpack.c.bf16 %v2463_v35, %v2461_v31 }
  0xaf   :  { %v2515_v4 = vld [vmem:[#allocation6 + $0x878] sm:$0xff] }
  0xb1   :  { %1613 = vmatpush1.bf16.msra.mxu0 %v1612_v17  ;;  %1869 = vmatpush1.bf16.msra.mxu1 %v1868_v18  ;;  %v2435_v17 = vld [vmem:[#allocation6 + $0x720] sm:$0xff]  ;;  %v2437_v18 = vld [vmem:[#allocation6 + $0x710] sm:$0xff] }
  0xb2   :  { %1615 = vmatprep.subr.bf16.mxu0 %v1614_v53  ;;  %1871 = vmatprep.subr.bf16.mxu1 %v1870_v20  ;;  %v1888_v53 = vpack.c.bf16 %v540_v48, %v536_v9  ;;  %v2439_v20 = vld [vmem:[#allocation6 + $0x748] sm:$0xff]  ;;  %v1636_v34 = vpack.c.bf16 %v2435_v17, %v2433_v16  ;;  %v2529_v9 = vld [vmem:[#allocation6 + $0x850] sm:$0xff]  ;;  %v1900_v48 = vpack.c.bf16 %v2467_v32, %v2465_v57 }
  0xb3   :  { %v1638_v51 = vpack.c.bf16 %v2441_v23, %v2439_v20  ;;  %v2541_v16 = vld [vmem:[#allocation6 + $0x8a8] sm:$0xff] }
  0xb5   :  { %1617 = vmatpush1.bf16.msra.mxu0 %v1616_v25  ;;  %1873 = vmatpush1.bf16.msra.mxu1 %v1872_v26  ;;  %v2447_v25 = vld [vmem:[#allocation6 + $0x760] sm:$0xff]  ;;  %v2449_v26 = vld [vmem:[#allocation6 + $0x750] sm:$0xff] }
  0xb6   :  { %1619 = vmatprep.subr.bf16.mxu0 %v1618_v29  ;;  %1875 = vmatprep.subr.bf16.mxu1 %v1874_v30  ;;  %v2455_v29 = vld [vmem:[#allocation6 + $0x7a8] sm:$0xff]  ;;  %v2457_v30 = vld [vmem:[#allocation6 + $0x798] sm:$0xff]  ;;  %v1640_v10 = vpack.c.bf16 %v2447_v25, %v2445_v27  ;;  %v1912_v27 = vpack.c.bf16 %v2537_v15, %v2529_v9  ;;  %v1658_v25 = vpack.c.bf16 %v2541_v16, %v2539_v62 }
  0xb7   :  { %v1898_v42 = vpack.c.bf16 %v2459_v56, %v2457_v30  ;;  %v88_v30 = vld [vmem:[#allocation4 + $0x38] sm:$0xff] }
  0xb9   :  { %1621 = vmatpush1.bf16.msra.mxu0 %v1620_v36  ;;  %1877 = vmatpush1.bf16.msra.mxu1 %v1876_v37  ;;  %v2471_v36 = vld [vmem:[#allocation6 + $0x7e8] sm:$0xff]  ;;  %v2473_v37 = vld [vmem:[#allocation6 + $0x7d8] sm:$0xff] }
  0xba   :  { %1623 = vmatprep.subr.bf16.mxu0 %v1622_v39  ;;  %1879 = vmatprep.subr.bf16.mxu1 %v1878_v43  ;;  %v1892_v39 = vpack.c.bf16 %v548_v19, %v2437_v18  ;;  %v2480_v43 = vld [vmem:[#allocation6 + $0x7c0] sm:$0xff]  ;;  %v1646_v13 = vpack.c.bf16 %v2471_v36, %v2469_v33  ;;  %v1902_v14 = vpack.c.bf16 %v2475_v58, %v2473_v37  ;;  %v103_v36 = vunpack.c.l.bf16 %v88_v30 }
  0xbb   :  { %v1648_v17 = vpack.c.bf16 %v2482_v44, %v2480_v43  ;;  %v1904_v18 = vpack.c.bf16 %v2486_v60, %v2484_v59  ;;  %v1650_v19 = vpack.c.bf16 %v2490_v50, %v2488_v45  ;;  %v104_v37 = vunpack.c.h.bf16 %v88_v30 }
  0xbc   :  { %v189_v60 = vrot.slane %v103_v36, 4 }
  0xbd   :  { %1625 = vmatpush1.bf16.msra.mxu0 %v1624_v52  ;;  %1881 = vmatpush1.bf16.msra.mxu1 %v1880_v61  ;;  %v1894_v52 = vpack.c.bf16 %v557_v22, %v2443_v24  ;;  %v2495_v61 = vld [vmem:[#allocation6 + $0x818] sm:$0xff] }
  0xbe   :  { %1627 = vmatprep.subr.bf16.mxu0 %v1626_v0  ;;  %1883 = vmatprep.subr.bf16.mxu1 %v1882_v1  ;;  %v2501_v0 = vld [vmem:[#allocation6 + $0x820] sm:$0xff]  ;;  %v2503_v1 = vld [vmem:[#allocation6 + $0x810] sm:$0xff]  ;;  %v1906_v20 = vpack.c.bf16 %v2497_v63, %v2495_v61 }
  0xbf   :  { %v1652_v23 = vpack.c.bf16 %v2501_v0, %v2499_v40  ;;  %v1908_v24 = vpack.c.bf16 %v2505_v2, %v2503_v1  ;;  %v603_v40 = vld [vmem:[#allocation6 + $0x8e8] sm:$0xff]  ;;  %v601_v0 = vld [vmem:[#allocation6 + $0x8d8] sm:$0xff] }
  0xc1   :  { %1629 = vmatpush1.bf16.msra.mxu0 %v1628_v5  ;;  %1885 = vmatpush1.bf16.msra.mxu1 %v1884_v6  ;;  %v1896_v5 = vpack.c.bf16 %v2451_v55, %v2449_v26  ;;  %v1642_v6 = vpack.c.bf16 %v2455_v29, %v2453_v28  ;;  %v83_v26 = vld [vmem:[#allocation4 + $0x10] sm:$0xff]  ;;  %v84_v55 = vld [vmem:[#allocation4 + $0x18] sm:$0xff] }
  0xc2   :  { %1631 = vmatprep.subr.bf16.mxu0 %v1630_v47  ;;  %1887 = vmatprep.subr.bf16.mxu1 %v1886_v8  ;;  %v2525_v47 = vld [vmem:[#allocation6 + $0x840] sm:$0xff]  ;;  %v87_v29 = vld [vmem:[#allocation4 + $0x30] sm:$0xff]  ;;  %v93_v56 = vunpack.c.l.bf16 %v83_v26  ;;  %v94_v31 = vunpack.c.h.bf16 %v83_v26  ;;  %v95_v35 = vunpack.c.l.bf16 %v84_v55  ;;  %v96_v57 = vunpack.c.h.bf16 %v84_v55 }
  0xc3   :  { %v2527_v8 = vld [vmem:[#allocation6 + $0x860] sm:$0xff]  ;;  %v101_v32 = vunpack.c.l.bf16 %v87_v29  ;;  %v102_v33 = vunpack.c.h.bf16 %v87_v29  ;;  %v190_v26 = vadd.f32 %v189_v60, %v103_v36 }
  0xc4   :  { %v1656_v22 = vpack.c.bf16 %v2527_v8, %v2525_v47  ;;  %v129_v58 = vrot.slane %v93_v56, 4  ;;  %v147_v43 = vrot.slane %v96_v57, 4  ;;  %v604_v47 = vld [vmem:[#allocation6 + $0x8f0] sm:$0xff]  ;;  %v607_v8 = vld [vmem:[#allocation6 + $0x908] sm:$0xff] }
  0xc5   :  { %1633 = vmatpush1.bf16.msra.mxu0 %v1632_v49  ;;  %1889 = vmatpush1.bf16.msra.mxu1 %v1888_v53  ;;  %v2549_v49 = vld [vmem:[#allocation6 + $0x898] sm:$0xff]  ;;  %v177_v44 = vrot.slane %v101_v32, 4  ;;  %v183_v59 = vrot.slane %v102_v33, 4 }
  0xc6   :  { %1635 = vmatprep.subr.bf16.mxu0 %v1634_v54  ;;  %1891 = vmatprep.subr.bf16.mxu1 %v1890_v21  ;;  %v2551_v53 = vld [vmem:[#allocation6 + $0x8b8] sm:$0xff]  ;;  %v1654_v54 = vpack.c.bf16 %v2511_v12, %v2507_v3  ;;  %v1910_v21 = vpack.c.bf16 %v2515_v4, %v2513_v41  ;;  %v130_v45 = vadd.f32 %v129_v58, %v93_v56  ;;  %v598_v41 = vld [vmem:[#allocation6 + $0x8c0] sm:$0xff] }
  0xc7   :  { %v148_v61 = vadd.f32 %v147_v43, %v96_v57  ;;  %v178_v63 = vadd.f32 %v177_v44, %v101_v32  ;;  %v599_v44 = vld [vmem:[#allocation6 + $0x8c8] sm:$0xff]  ;;  %v602_v4 = vld [vmem:[#allocation6 + $0x8e0] sm:$0xff] }
  0xc8   :  { %v1662_v3 = vpack.c.bf16 %v603_v40, %v599_v44  ;;  %v1664_v62 = vpack.c.bf16 %v602_v4, %v598_v41  ;;  %v629_v44 = vld [vmem:[#allocation6 + $0x9b8] sm:$0xff]  ;;  %v622_v40 = vld [vmem:[#allocation6 + $0x980] sm:$0xff] }
  0xc9   :  { %1637 = vmatpush1.bf16.msra.mxu0 %v1636_v34  ;;  %1893 = vmatpush1.bf16.msra.mxu1 %v1892_v39  ;;  %v135_v34 = vrot.slane %v94_v31, 4  ;;  %v141_v39 = vrot.slane %v95_v35, 4  ;;  %v149_v55 = vrot.slane %v148_v61, 2  ;;  %v179_v29 = vrot.slane %v178_v63, 2  ;;  %v634_v41 = vld [vmem:[#allocation6 + $0x9e0] sm:$0xff] }
  0xca   :  { %1639 = vmatprep.subr.bf16.mxu0 %v1638_v51  ;;  %1895 = vmatprep.subr.bf16.mxu1 %v1894_v52  ;;  %v195_v52 = vrot.slane %v104_v37, 4 }
  0xcb   :  { %v136_v50 = vadd.f32 %v135_v34, %v94_v31  ;;  %v142_v51 = vadd.f32 %v141_v39, %v95_v35  ;;  %v191_v31 = vrot.slane %v190_v26, 2 }
  0xcc   :  { %v196_v28 = vadd.f32 %v195_v52, %v104_v37 }
  0xcd   :  { %1641 = vmatpush1.bf16.msra.mxu0 %v1640_v10  ;;  %1897 = vmatpush1.bf16.msra.mxu1 %v1896_v5  ;;  %v184_v10 = vadd.f32 %v183_v59, %v102_v33  ;;  %v131_v5 = vrot.slane %v130_v45, 2  ;;  %v192_v36 = vadd.f32 %v191_v31, %v190_v26  ;;  %v613_v26 = vld [vmem:[#allocation6 + $0x938] sm:$0xff] }
  0xce   :  { %1643 = vmatprep.subr.bf16.mxu0 %v1642_v6  ;;  %1899 = vmatprep.subr.bf16.mxu1 %v1898_v42  ;;  %v137_v6 = vrot.slane %v136_v50, 2  ;;  %v143_v42 = vrot.slane %v142_v51, 2  ;;  %v197_v57 = vrot.slane %v196_v28, 2 }
  0xcf   :  { %v185_v30 = vrot.slane %v184_v10, 2 }
  0xd0   :  { %v144_v56 = vadd.f32 %v143_v42, %v142_v51  ;;  %v198_v43 = vadd.f32 %v197_v57, %v196_v28  ;;  %v609_v42 = vld [vmem:[#allocation6 + $0x918] sm:$0xff] }
  0xd1   :  { %1645 = vmatpush1.bf16.msra.mxu0 %v1644_v46  ;;  %1901 = vmatpush1.bf16.msra.mxu1 %v1900_v48  ;;  %v132_v46 = vadd.f32 %v131_v5, %v130_v45  ;;  %v138_v48 = vadd.f32 %v137_v6, %v136_v50  ;;  %v186_v35 = vadd.f32 %v185_v30, %v184_v10  ;;  %v193_v45 = vrot.slane %v192_v36, 1  ;;  %v608_v30 = vld [vmem:[#allocation6 + $0x910] sm:$0xff] }
  0xd2   :  { %1647 = vmatprep.subr.bf16.mxu0 %v1646_v13  ;;  %1903 = vmatprep.subr.bf16.mxu1 %v1902_v14  ;;  %v150_v13 = vadd.f32 %v149_v55, %v148_v61  ;;  %v180_v14 = vadd.f32 %v179_v29, %v178_v63  ;;  %v145_v58 = vrot.slane %v144_v56, 1  ;;  %v199_v28 = vrot.slane %v198_v43, 1  ;;  %v606_v29 = vld [vmem:[#allocation6 + $0x900] sm:$0xff] }
  0xd3   :  { %v133_v32 = vrot.slane %v132_v46, 1  ;;  %v139_v33 = vrot.slane %v138_v48, 1  ;;  %v187_v39 = vrot.slane %v186_v35, 1  ;;  %v194_v51 = vadd.f32 %v193_v45, %v192_v36  ;;  %v618_v36 = vld [vmem:[#allocation6 + $0x960] sm:$0xff] }
  0xd4   :  { %v151_v37 = vrot.slane %v150_v13, 1  ;;  %v181_v34 = vrot.slane %v180_v14, 1  ;;  %v200_v63 = vadd.f32 %v199_v28, %v198_v43  ;;  %v2638_v6 = vpack.c.bf16 %v2551_v53, %v2549_v49  ;;  %v610_v49 = vld [vmem:[#allocation6 + $0x920] sm:$0xff]  ;;  %v628_v28 = vld [vmem:[#allocation6 + $0x9b0] sm:$0xff] }
  0xd5   :  { %1649 = vmatpush1.bf16.msra.mxu0 %v1648_v17  ;;  %1905 = vmatpush1.bf16.msra.mxu1 %v1904_v18  ;;  %v590_v17 = vld [vmem:[#allocation6 + $0x880] sm:$0xff]  ;;  %v134_v59 = vadd.f32 %v133_v32, %v132_v46  ;;  %v140_v60 = vadd.f32 %v139_v33, %v138_v48  ;;  %v1922_v53 = vpack.c.bf16 %v613_v26, %v609_v42  ;;  %v612_v46 = vld [vmem:[#allocation6 + $0x930] sm:$0xff]  ;;  %v615_v48 = vld [vmem:[#allocation6 + $0x948] sm:$0xff] }
  0xd6   :  { %1651 = vmatprep.subr.bf16.mxu0 %v1650_v19  ;;  %1907 = vmatprep.subr.bf16.mxu1 %v1906_v20  ;;  %v594_v18 = vld [vmem:[#allocation6 + $0x8a0] sm:$0xff]  ;;  %v592_v19 = vld [vmem:[#allocation6 + $0x890] sm:$0xff]  ;;  %v152_v1 = vadd.f32 %v151_v37, %v150_v13  ;;  %v182_v2 = vadd.f32 %v181_v34, %v180_v14  ;;  %v269_v15 = vcombine.low %v194_v51, %v200_v63  ;;  %v619_v13 = vld [vmem:[#allocation6 + $0x968] sm:$0xff] }
  0xd7   :  { %v596_v20 = vld [vmem:[#allocation6 + $0x8b0] sm:$0xff]  ;;  %v1660_v50 = vpack.c.bf16 %v594_v18, %v590_v17  ;;  %v234_v52 = vcombine.low %v134_v59, %v140_v60  ;;  %v617_v14 = vld [vmem:[#allocation6 + $0x958] sm:$0xff]  ;;  %v1668_v32 = vpack.c.bf16 %v610_v49, %v606_v29  ;;  %v1924_v33 = vpack.c.bf16 %v612_v46, %v608_v30  ;;  %v638_v26 = vld [vmem:[#allocation6 + $0xa00] sm:$0xff] }
  0xd8   :  { %1032 = vmatmul.mubr.f32.vlgmr.msra.gmra.mrb[0].mxu0 %v2429_v7  ;;  %1316 = vmatmul.mubr.f32.vlgmr.msra.gmra.mrb[0].mxu1 %v2429_v7  ;;  %v146_v7 = vadd.f32 %v145_v58, %v144_v56  ;;  %v1916_v61 = vpack.c.bf16 %v596_v20, %v592_v19  ;;  %v283_v55 = vrot.slane %v269_v15, %v2344_v38  ;;  %v614_v58 = vld [vmem:[#allocation6 + $0x940] sm:$0xff]  ;;  %v616_v37 = vld [vmem:[#allocation6 + $0x950] sm:$0xff]  ;;  %v627_v19 = vld [vmem:[#allocation6 + $0x9a8] sm:$0xff] }
  0xd9   :  { %1653 = vmatpush1.bf16.msra.mxu0 %v1652_v23  ;;  %1909 = vmatpush1.bf16.msra.mxu1 %v1908_v24  ;;  %v605_v23 = vld [vmem:[#allocation6 + $0x8f8] sm:$0xff]  ;;  %v188_v24 = vadd.f32 %v187_v39, %v186_v35  ;;  %v1670_v17 = vpack.c.bf16 %v619_v13, %v615_v48  ;;  %v620_v34 = vld [vmem:[#allocation6 + $0x970] sm:$0xff]  ;;  %v623_v39 = vld [vmem:[#allocation6 + $0x988] sm:$0xff] }
  0xda   :  { %1655 = vmatprep.subr.bf16.mxu0 %v1654_v54  ;;  %1911 = vmatprep.subr.bf16.mxu1 %v1910_v21  ;;  %v235_v10 = vcombine.low %v146_v7, %v152_v1  ;;  %v1918_v12 = vpack.c.bf16 %v605_v23, %v601_v0  ;;  %v600_v54 = vld [vmem:[#allocation6 + $0x8d0] sm:$0xff]  ;;  %v242_v21 = vrot.slane %v234_v52, %v2344_v38  ;;  %v621_v35 = vld [vmem:[#allocation6 + $0x978] sm:$0xff]  ;;  %v626_v0 = vld [vmem:[#allocation6 + $0x9a0] sm:$0xff] }
  0xdb   :  { %v268_v5 = vcombine.low %v182_v2, %v188_v24  ;;  %v1920_v16 = vpack.c.bf16 %v604_v47, %v600_v54  ;;  %v1926_v18 = vpack.c.bf16 %v621_v35, %v617_v14  ;;  %v625_v20 = vld [vmem:[#allocation6 + $0x998] sm:$0xff]  ;;  %v1672_v7 = vpack.c.bf16 %v618_v36, %v614_v58  ;;  %v624_v24 = vld [vmem:[#allocation6 + $0x990] sm:$0xff]  ;;  %v635_v52 = vld [vmem:[#allocation6 + $0x9e8] sm:$0xff] }
  0xdc   :  { %v249_v9 = vrot.slane %v235_v10, %v2344_v38  ;;  %v1928_v45 = vpack.c.bf16 %v620_v34, %v616_v37  ;;  %v1674_v1 = vpack.c.bf16 %v627_v19, %v623_v39  ;;  %v1930_v2 = vpack.c.bf16 %v629_v44, %v625_v20  ;;  %v637_v63 = vld [vmem:[#allocation6 + $0x9f8] sm:$0xff]  ;;  %v639_v47 = vld [vmem:[#allocation6 + $0xa08] sm:$0xff]  ;;  %v644_v29 = vld [vmem:[#allocation6 + $0xa30] sm:$0xff] }
  0xdd   :  { %1657 = vmatpush1.bf16.msra.mxu0 %v1656_v22  ;;  %1913 = vmatpush1.bf16.msra.mxu1 %v1912_v27  ;;  %v611_v22 = vld [vmem:[#allocation6 + $0x928] sm:$0xff]  ;;  %v276_v27 = vrot.slane %v268_v5, %v2344_v38  ;;  %v1676_v5 = vpack.c.bf16 %v626_v0, %v622_v40  ;;  %v645_v15 = vld [vmem:[#allocation6 + $0xa38] sm:$0xff]  ;;  %v650_v13 = vld [vmem:[#allocation6 + $0xa60] sm:$0xff] }
  0xde   :  { %1659 = vmatprep.subr.bf16.mxu0 %v1658_v25  ;;  %1915 = vmatprep.subr.bf16.mxu1 %v2638_v6  ;;  %v1666_v25 = vpack.c.bf16 %v611_v22, %v607_v8  ;;  %v250_v56 = vcombine.low %v242_v21, %v249_v9  ;;  %v632_v21 = vld [vmem:[#allocation6 + $0x9d0] sm:$0xff]  ;;  %v643_v22 = vld [vmem:[#allocation6 + $0xa28] sm:$0xff]  ;;  %v641_v9 = vld [vmem:[#allocation6 + $0xa18] sm:$0xff] }
  0xdf   :  { %v284_v31 = vcombine.low %v276_v27, %v283_v55  ;;  %v636_v6 = vld [vmem:[#allocation6 + $0x9f0] sm:$0xff]  ;;  %v642_v55 = vld [vmem:[#allocation6 + $0xa20] sm:$0xff]  ;;  %v647_v49 = vld [vmem:[#allocation6 + $0xa48] sm:$0xff] }
  0xe0   :  { %v1936_v42 = vpack.c.bf16 %v636_v6, %v632_v21  ;;  %v649_v30 = vld [vmem:[#allocation6 + $0xa58] sm:$0xff]  ;;  %v1684_v48 = vpack.c.bf16 %v642_v55, %v638_v26  ;;  %v659_v58 = vld [vmem:[#allocation6 + $0xaa8] sm:$0xff]  ;;  %v654_v34 = vld [vmem:[#allocation6 + $0xa80] sm:$0xff] }
  0xe1   :  { %1661 = vmatpush1.bf16.msra.mxu0 %v1660_v50  ;;  %1917 = vmatpush1.bf16.msra.mxu1 %v1916_v61  ;;  %v300_v57 = vrot.slane %v284_v31, 7  ;;  %v631_v50 = vld [vmem:[#allocation6 + $0x9c8] sm:$0xff]  ;;  %v633_v61 = vld [vmem:[#allocation6 + $0x9d8] sm:$0xff]  ;;  %v646_v31 = vld [vmem:[#allocation6 + $0xa40] sm:$0xff] }
  0xe2   :  { %1663 = vmatprep.subr.bf16.mxu0 %v1662_v3  ;;  %1919 = vmatprep.subr.bf16.mxu1 %v1918_v12  ;;  %v1932_v3 = vpack.c.bf16 %v628_v28, %v624_v24  ;;  %v630_v12 = vld [vmem:[#allocation6 + $0x9c0] sm:$0xff]  ;;  %v1678_v4 = vpack.c.bf16 %v635_v52, %v631_v50  ;;  %v1934_v54 = vpack.c.bf16 %v637_v63, %v633_v61  ;;  %v653_v46 = vld [vmem:[#allocation6 + $0xa78] sm:$0xff]  ;;  %v656_v20 = vld [vmem:[#allocation6 + $0xa90] sm:$0xff] }
  0xe3   :  { %v301_v43 = vsel %vm290_vm0, %v300_v57, %v250_v56  ;;  %v1680_v27 = vpack.c.bf16 %v634_v41, %v630_v12  ;;  %v1942_v35 = vpack.c.bf16 %v653_v46, %v649_v30  ;;  %v657_v36 = vld [vmem:[#allocation6 + $0xa98] sm:$0xff]  ;;  %v658_v39 = vld [vmem:[#allocation6 + $0xaa0] sm:$0xff]  ;;  %v660_v44 = vld [vmem:[#allocation6 + $0xab0] sm:$0xff] }
  0xe4   :  { %v302_v59 = vsel %vm292_vm1, %v300_v57, %v301_v43  ;;  %v1692_v40 = vpack.c.bf16 %v658_v39, %v654_v34  ;;  %v1948_v0 = vpack.c.bf16 %v660_v44, %v656_v20  ;;  %v664_v28 = vld [vmem:[#allocation6 + $0xad0] sm:$0xff]  ;;  %v671_v52 = vld [vmem:[#allocation6 + $0xb08] sm:$0xff]  ;;  %v673_v63 = vld [vmem:[#allocation6 + $0xb18] sm:$0xff] }
  0xe5   :  { %1665 = vmatpush1.bf16.msra.mxu0 %v1664_v62  ;;  %1921 = vmatpush1.bf16.msra.mxu1 %v1920_v16  ;;  %v303_v60 = vsel %vm294_vm2, %v300_v57, %v302_v59  ;;  %v1682_v62 = vpack.c.bf16 %v643_v22, %v639_v47  ;;  %v1938_v16 = vpack.c.bf16 %v645_v15, %v641_v9  ;;  %v663_v59 = vld [vmem:[#allocation6 + $0xac8] sm:$0xff]  ;;  %v668_v50 = vld [vmem:[#allocation6 + $0xaf0] sm:$0xff]  ;;  %v670_v41 = vld [vmem:[#allocation6 + $0xb00] sm:$0xff] }
  0xe6   :  { %1667 = vmatprep.subr.bf16.mxu0 %v1666_v25  ;;  %1923 = vmatprep.subr.bf16.mxu1 %v1922_v53  ;;  %v304_v23 = vsel %vm296_vm3, %v300_v57, %v303_v60  ;;  %v640_v25 = vld [vmem:[#allocation6 + $0xa10] sm:$0xff]  ;;  %v651_v53 = vld [vmem:[#allocation6 + $0xa68] sm:$0xff]  ;;  %v1952_v12 = vpack.c.bf16 %v668_v50, %v664_v28  ;;  %v681_v9 = vld [vmem:[#allocation6 + $0xb58] sm:$0xff] }
  0xe7   :  { %v2605_v51 = vmul.f32 0.125, %v304_v23  ;;  %v1940_v56 = vpack.c.bf16 %v644_v29, %v640_v25  ;;  %v1686_v14 = vpack.c.bf16 %v651_v53, %v647_v49  ;;  %v648_v57 = vld [vmem:[#allocation6 + $0xa50] sm:$0xff]  ;;  %v667_v60 = vld [vmem:[#allocation6 + $0xae8] sm:$0xff]  ;;  %v662_v23 = vld [vmem:[#allocation6 + $0xac0] sm:$0xff] }
  0xe8   :  { %v675_v61 = vld [vmem:[#allocation6 + $0xb28] sm:$0xff]  ;;  %v672_v6 = vld [vmem:[#allocation6 + $0xb10] sm:$0xff]  ;;  %v685_v15 = vld [vmem:[#allocation6 + $0xb78] sm:$0xff] }
  0xe9   :  { %1669 = vmatpush1.bf16.msra.mxu0 %v1668_v32  ;;  %1925 = vmatpush1.bf16.msra.mxu1 %v1924_v33  ;;  %v2609_v10 = vrot.slane %v2605_v51, %v2344_v38  ;;  %v652_v32 = vld [vmem:[#allocation6 + $0xa70] sm:$0xff]  ;;  %v655_v33 = vld [vmem:[#allocation6 + $0xa88] sm:$0xff]  ;;  %v678_v26 = vld [vmem:[#allocation6 + $0xb40] sm:$0xff] }
  0xea   :  { %1671 = vmatprep.subr.bf16.mxu0 %v1670_v17  ;;  %1927 = vmatprep.subr.bf16.mxu1 %v1926_v18  ;;  %v661_v17 = vld [vmem:[#allocation6 + $0xab8] sm:$0xff]  ;;  %v1688_v18 = vpack.c.bf16 %v650_v13, %v646_v31  ;;  %v1944_v37 = vpack.c.bf16 %v652_v32, %v648_v57  ;;  %v1690_v43 = vpack.c.bf16 %v659_v58, %v655_v33  ;;  %v676_v47 = vld [vmem:[#allocation6 + $0xb30] sm:$0xff]  ;;  %v683_v22 = vld [vmem:[#allocation6 + $0xb68] sm:$0xff] }
  0xeb   :  { %v886_v8 = vcombine.high %v2609_v10, %v2609_v10  ;;  %v1946_v19 = vpack.c.bf16 %v661_v17, %v657_v36  ;;  %v682_v55 = vld [vmem:[#allocation6 + $0xb60] sm:$0xff]  ;;  %v680_v25 = vld [vmem:[#allocation6 + $0xb50] sm:$0xff]  ;;  %v687_v49 = vld [vmem:[#allocation6 + $0xb88] sm:$0xff] }
  0xec   :  { %v684_v29 = vld [vmem:[#allocation6 + $0xb70] sm:$0xff]  ;;  %v691_v53 = vld [vmem:[#allocation6 + $0xba8] sm:$0xff]  ;;  %v689_v30 = vld [vmem:[#allocation6 + $0xb98] sm:$0xff] }
  0xed   :  { %1673 = vmatpush1.bf16.msra.mxu0 %v1672_v7  ;;  %1929 = vmatpush1.bf16.msra.mxu1 %v1928_v45  ;;  %v665_v7 = vld [vmem:[#allocation6 + $0xad8] sm:$0xff]  ;;  %v686_v31 = vld [vmem:[#allocation6 + $0xb80] sm:$0xff]  ;;  %v688_v57 = vld [vmem:[#allocation6 + $0xb90] sm:$0xff] }
  0xee   :  { %1675 = vmatprep.subr.bf16.mxu0 %v1674_v1  ;;  %1931 = vmatprep.subr.bf16.mxu1 %v1930_v2  ;;  %v669_v45 = vld [vmem:[#allocation6 + $0xaf8] sm:$0xff]  ;;  %v666_v1 = vld [vmem:[#allocation6 + $0xae0] sm:$0xff]  ;;  %v1694_v2 = vpack.c.bf16 %v667_v60, %v663_v59  ;;  %v692_v32 = vld [vmem:[#allocation6 + $0xbb0] sm:$0xff] }
  0xef   :  { %1102 = vmatprep.mubr.f32.mxu0 %v886_v8  ;;  %1386 = vmatprep.mubr.f32.mxu1 %v886_v8  ;;  %v1950_v24 = vpack.c.bf16 %v669_v45, %v665_v7  ;;  %v679_v8 = vld [vmem:[#allocation6 + $0xb48] sm:$0xff]  ;;  %v693_v46 = vld [vmem:[#allocation6 + $0xbb8] sm:$0xff]  ;;  %v690_v13 = vld [vmem:[#allocation6 + $0xba0] sm:$0xff] }
  0xf0   :  { %v695_v33 = vld [vmem:[#allocation6 + $0xbc8] sm:$0xff]  ;;  %v697_v36 = vld [vmem:[#allocation6 + $0xbd8] sm:$0xff]  ;;  %v694_v34 = vld [vmem:[#allocation6 + $0xbc0] sm:$0xff] }
  0xf1   :  { %1677 = vmatpush1.bf16.msra.mxu0 %v1676_v5  ;;  %1933 = vmatpush1.bf16.msra.mxu1 %v1932_v3  ;;  %v677_v5 = vld [vmem:[#allocation6 + $0xb38] sm:$0xff]  ;;  %v1696_v3 = vpack.c.bf16 %v666_v1, %v662_v23  ;;  %v699_v58 = vld [vmem:[#allocation6 + $0xbe8] sm:$0xff]  ;;  %v698_v39 = vld [vmem:[#allocation6 + $0xbe0] sm:$0xff] }
  0xf2   :  { %1679 = vmatprep.subr.bf16.mxu0 %v1678_v4  ;;  %1935 = vmatprep.subr.bf16.mxu1 %v1934_v54  ;;  %v674_v4 = vld [vmem:[#allocation6 + $0xb20] sm:$0xff]  ;;  %v1698_v54 = vpack.c.bf16 %v675_v61, %v671_v52  ;;  %v1954_v21 = vpack.c.bf16 %v677_v5, %v673_v63  ;;  %v701_v17 = vld [vmem:[#allocation6 + $0xbf8] sm:$0xff]  ;;  %v696_v20 = vld [vmem:[#allocation6 + $0xbd0] sm:$0xff] }
  0xf3   :  { %v700_v44 = vld [vmem:[#allocation6 + $0xbf0] sm:$0xff]  ;;  %v703_v59 = vld [vmem:[#allocation6 + $0xc08] sm:$0xff]  ;;  %v705_v7 = vld [vmem:[#allocation6 + $0xc18] sm:$0xff] }
  0xf4   :  { %v707_v60 = vld [vmem:[#allocation6 + $0xc28] sm:$0xff]  ;;  %v709_v45 = vld [vmem:[#allocation6 + $0xc38] sm:$0xff]  ;;  %v1968_v23 = vpack.c.bf16 %v700_v44, %v696_v20  ;;  %v702_v1 = vld [vmem:[#allocation6 + $0xc00] sm:$0xff] }
  0xf5   :  { %1681 = vmatpush1.bf16.msra.mxu0 %v1680_v27  ;;  %1937 = vmatpush1.bf16.msra.mxu1 %v1936_v42  ;;  %v1700_v27 = vpack.c.bf16 %v674_v4, %v670_v41  ;;  %v1956_v42 = vpack.c.bf16 %v676_v47, %v672_v6  ;;  %v1970_v28 = vpack.c.bf16 %v709_v45, %v705_v7  ;;  %v704_v50 = vld [vmem:[#allocation6 + $0xc10] sm:$0xff]  ;;  %v711_v61 = vld [vmem:[#allocation6 + $0xc48] sm:$0xff]  ;;  %v713_v5 = vld [vmem:[#allocation6 + $0xc58] sm:$0xff] }
  0xf6   :  { %1683 = vmatprep.subr.bf16.mxu0 %v1682_v62  ;;  %1939 = vmatprep.subr.bf16.mxu1 %v1938_v16  ;;  %v1702_v62 = vpack.c.bf16 %v683_v22, %v679_v8  ;;  %v1958_v16 = vpack.c.bf16 %v685_v15, %v681_v9  ;;  %v708_v52 = vld [vmem:[#allocation6 + $0xc30] sm:$0xff]  ;;  %v715_v63 = vld [vmem:[#allocation6 + $0xc68] sm:$0xff]  ;;  %v710_v4 = vld [vmem:[#allocation6 + $0xc40] sm:$0xff] }
  0xf7   :  { %v1972_v41 = vpack.c.bf16 %v708_v52, %v704_v50  ;;  %v712_v47 = vld [vmem:[#allocation6 + $0xc50] sm:$0xff]  ;;  %v719_v22 = vld [vmem:[#allocation6 + $0xc88] sm:$0xff]  ;;  %v721_v15 = vld [vmem:[#allocation6 + $0xc98] sm:$0xff] }
  0xf8   :  { %v716_v8 = vld [vmem:[#allocation6 + $0xc70] sm:$0xff]  ;;  %v723_v9 = vld [vmem:[#allocation6 + $0xca8] sm:$0xff]  ;;  %v745_v7 = vld [vmem:[#allocation6 + $0xd58] sm:$0xff] }
  0xf9   :  { %1685 = vmatpush1.bf16.msra.mxu0 %v1684_v48  ;;  %1941 = vmatpush1.bf16.msra.mxu1 %v1940_v56  ;;  %v1704_v48 = vpack.c.bf16 %v682_v55, %v678_v26  ;;  %v1960_v56 = vpack.c.bf16 %v684_v29, %v680_v25  ;;  %v1976_v26 = vpack.c.bf16 %v716_v8, %v712_v47  ;;  %v718_v55 = vld [vmem:[#allocation6 + $0xc80] sm:$0xff]  ;;  %v720_v29 = vld [vmem:[#allocation6 + $0xc90] sm:$0xff]  ;;  %v749_v45 = vld [vmem:[#allocation6 + $0xd78] sm:$0xff] }
  0xfa   :  { %1687 = vmatprep.subr.bf16.mxu0 %v1686_v14  ;;  %1943 = vmatprep.subr.bf16.mxu1 %v1942_v35  ;;  %v1706_v14 = vpack.c.bf16 %v691_v53, %v687_v49  ;;  %v1962_v35 = vpack.c.bf16 %v693_v46, %v689_v30  ;;  %v724_v49 = vld [vmem:[#allocation6 + $0xcb0] sm:$0xff]  ;;  %v727_v53 = vld [vmem:[#allocation6 + $0xcc8] sm:$0xff]  ;;  %v729_v46 = vld [vmem:[#allocation6 + $0xcd8] sm:$0xff] }
  0xfb   :  { %v731_v30 = vld [vmem:[#allocation6 + $0xce8] sm:$0xff]  ;;  %v736_v20 = vld [vmem:[#allocation6 + $0xd10] sm:$0xff] }
  0xfc   :  { %v740_v44 = vld [vmem:[#allocation6 + $0xd30] sm:$0xff]  ;;  %v751_v52 = vld [vmem:[#allocation6 + $0xd88] sm:$0xff] }
  0xfd   :  { %1689 = vmatpush1.bf16.msra.mxu0 %v1688_v18  ;;  %1945 = vmatpush1.bf16.msra.mxu1 %v1944_v37  ;;  %v1708_v18 = vpack.c.bf16 %v690_v13, %v686_v31  ;;  %v1964_v37 = vpack.c.bf16 %v692_v32, %v688_v57  ;;  %v726_v31 = vld [vmem:[#allocation6 + $0xcc0] sm:$0xff]  ;;  %v728_v57 = vld [vmem:[#allocation6 + $0xcd0] sm:$0xff]  ;;  %v759_v8 = vld [vmem:[#allocation6 + $0xdc8] sm:$0xff] }
  0xfe   :  { %1691 = vmatprep.subr.bf16.mxu0 %v1690_v43  ;;  %1947 = vmatprep.subr.bf16.mxu1 %v1946_v19  ;;  %v1710_v43 = vpack.c.bf16 %v699_v58, %v695_v33  ;;  %v1966_v19 = vpack.c.bf16 %v701_v17, %v697_v36  ;;  %v730_v13 = vld [vmem:[#allocation6 + $0xce0] sm:$0xff]  ;;  %v732_v32 = vld [vmem:[#allocation6 + $0xcf0] sm:$0xff]  ;;  %v735_v33 = vld [vmem:[#allocation6 + $0xd08] sm:$0xff] }
  0xff   :  { %v739_v58 = vld [vmem:[#allocation6 + $0xd28] sm:$0xff]  ;;  %v737_v36 = vld [vmem:[#allocation6 + $0xd18] sm:$0xff]  ;;  %v748_v50 = vld [vmem:[#allocation6 + $0xd70] sm:$0xff] }
 0x100   :  { %v741_v17 = vld [vmem:[#allocation6 + $0xd38] sm:$0xff]  ;;  %v756_v47 = vld [vmem:[#allocation6 + $0xdb0] sm:$0xff] }
 0x101   :  { %1693 = vmatpush1.bf16.msra.mxu0 %v1692_v40  ;;  %1949 = vmatpush1.bf16.msra.mxu1 %v1948_v0  ;;  %v871_v40 = vcombine.high %v2605_v51, %v2605_v51  ;;  %v1712_v0 = vpack.c.bf16 %v698_v39, %v694_v34  ;;  %v734_v34 = vld [vmem:[#allocation6 + $0xd00] sm:$0xff] }
 0x102   :  { %1695 = vmatprep.subr.bf16.mxu0 %v1694_v2  ;;  %1951 = vmatprep.subr.bf16.mxu1 %v1950_v24  ;;  %v706_v2 = vld [vmem:[#allocation6 + $0xc20] sm:$0xff]  ;;  %v1714_v24 = vpack.c.bf16 %v707_v60, %v703_v59  ;;  %v743_v59 = vld [vmem:[#allocation6 + $0xd48] sm:$0xff] }
 0x103   :  { %v1716_v51 = vpack.c.bf16 %v706_v2, %v702_v1  ;;  %v738_v39 = vld [vmem:[#allocation6 + $0xd20] sm:$0xff]  ;;  %v747_v60 = vld [vmem:[#allocation6 + $0xd68] sm:$0xff] }
 0x104   :  { %v746_v1 = vld [vmem:[#allocation6 + $0xd60] sm:$0xff]  ;;  %v1734_v2 = vpack.c.bf16 %v747_v60, %v743_v59  ;;  %v785_v59 = vld [vmem:[#allocation6 + $0xe98] sm:$0xff] }
 0x105   :  { %1697 = vmatpush1.bf16.msra.mxu0 %v1696_v3  ;;  %1953 = vmatpush1.bf16.msra.mxu1 %v1952_v12  ;;  %v717_v3 = vld [vmem:[#allocation6 + $0xc78] sm:$0xff]  ;;  %v2616_v12 = vrot.slane %v871_v40, %v2344_v38  ;;  %v1732_v40 = vpack.c.bf16 %v738_v39, %v734_v34 }
 0x106   :  { %1699 = vmatprep.subr.bf16.mxu0 %v1698_v54  ;;  %1955 = vmatprep.subr.bf16.mxu1 %v1954_v21  ;;  %v714_v54 = vld [vmem:[#allocation6 + $0xc60] sm:$0xff]  ;;  %v1718_v21 = vpack.c.bf16 %v715_v63, %v711_v61  ;;  %v1974_v6 = vpack.c.bf16 %v717_v3, %v713_v5  ;;  %v755_v61 = vld [vmem:[#allocation6 + $0xda8] sm:$0xff]  ;;  %v753_v63 = vld [vmem:[#allocation6 + $0xd98] sm:$0xff] }
 0x107   :  { %v887_v38 = vcombine.high %v2616_v12, %v2616_v12  ;;  %v757_v5 = vld [vmem:[#allocation6 + $0xdb8] sm:$0xff] }
 0x108   :  { %v789_v60 = vld [vmem:[#allocation6 + $0xeb8] sm:$0xff] }
 0x109   :  { %1701 = vmatpush1.bf16.msra.mxu0 %v1700_v27  ;;  %1957 = vmatpush1.bf16.msra.mxu1 %v1956_v42  ;;  %v725_v27 = vld [vmem:[#allocation6 + $0xcb8] sm:$0xff]  ;;  %v1720_v42 = vpack.c.bf16 %v714_v54, %v710_v4  ;;  %v754_v4 = vld [vmem:[#allocation6 + $0xda0] sm:$0xff]  ;;  %v1738_v54 = vpack.c.bf16 %v755_v61, %v751_v52 }
 0x10a   :  { %1703 = vmatprep.subr.bf16.mxu0 %v1702_v62  ;;  %1959 = vmatprep.subr.bf16.mxu1 %v1958_v16  ;;  %v722_v62 = vld [vmem:[#allocation6 + $0xca0] sm:$0xff]  ;;  %v1722_v16 = vpack.c.bf16 %v723_v9, %v719_v22  ;;  %v1978_v25 = vpack.c.bf16 %v725_v27, %v721_v15  ;;  %v763_v22 = vld [vmem:[#allocation6 + $0xde8] sm:$0xff]  ;;  %v761_v9 = vld [vmem:[#allocation6 + $0xdd8] sm:$0xff] }
 0x10b   :  { %v765_v15 = vld [vmem:[#allocation6 + $0xdf8] sm:$0xff] }
 0x10c   :  { %v793_v52 = vld [vmem:[#allocation6 + $0xed8] sm:$0xff] }
 0x10d   :  { %1705 = vmatpush1.bf16.msra.mxu0 %v1704_v48  ;;  %1961 = vmatpush1.bf16.msra.mxu1 %v1960_v56  ;;  %v733_v48 = vld [vmem:[#allocation6 + $0xcf8] sm:$0xff]  ;;  %v1980_v56 = vpack.c.bf16 %v724_v49, %v720_v29  ;;  %v767_v29 = vld [vmem:[#allocation6 + $0xe08] sm:$0xff] }
 0x10e   :  { %1707 = vmatprep.subr.bf16.mxu0 %v1706_v14  ;;  %1963 = vmatprep.subr.bf16.mxu1 %v1962_v35  ;;  %v1726_v14 = vpack.c.bf16 %v731_v30, %v727_v53  ;;  %v1982_v35 = vpack.c.bf16 %v733_v48, %v729_v46  ;;  %v771_v49 = vld [vmem:[#allocation6 + $0xe28] sm:$0xff]  ;;  %v769_v53 = vld [vmem:[#allocation6 + $0xe18] sm:$0xff] }
 0x10f   :  { %v773_v30 = vld [vmem:[#allocation6 + $0xe38] sm:$0xff] }
 0x110   :  { %v797_v61 = vld [vmem:[#allocation6 + $0xef8] sm:$0xff] }
 0x111   :  { %1709 = vmatpush1.bf16.msra.mxu0 %v1708_v18  ;;  %1965 = vmatpush1.bf16.msra.mxu1 %v1964_v37  ;;  %v1728_v18 = vpack.c.bf16 %v730_v13, %v726_v31  ;;  %v1984_v37 = vpack.c.bf16 %v732_v32, %v728_v57  ;;  %v1746_v31 = vpack.c.bf16 %v771_v49, %v767_v29  ;;  %v775_v57 = vld [vmem:[#allocation6 + $0xe48] sm:$0xff]  ;;  %v809_v29 = vld [vmem:[#allocation6 + $0xf58] sm:$0xff] }
 0x112   :  { %1711 = vmatprep.subr.bf16.mxu0 %v1710_v43  ;;  %1967 = vmatprep.subr.bf16.mxu1 %v1966_v19  ;;  %v1730_v43 = vpack.c.bf16 %v739_v58, %v735_v33  ;;  %v1986_v19 = vpack.c.bf16 %v741_v17, %v737_v36  ;;  %v2002_v13 = vpack.c.bf16 %v773_v30, %v769_v53  ;;  %v779_v32 = vld [vmem:[#allocation6 + $0xe68] sm:$0xff]  ;;  %v777_v33 = vld [vmem:[#allocation6 + $0xe58] sm:$0xff] }
 0x113   :  { %v781_v58 = vld [vmem:[#allocation6 + $0xe78] sm:$0xff]  ;;  %v1750_v34 = vpack.c.bf16 %v779_v32, %v775_v57 }
 0x114   :  { %v2006_v39 = vpack.c.bf16 %v781_v58, %v777_v33  ;;  %v813_v49 = vld [vmem:[#allocation6 + $0xf78] sm:$0xff] }
 0x115   :  { %1713 = vmatpush1.bf16.msra.mxu0 %v1712_v0  ;;  %1969 = vmatpush1.bf16.msra.mxu1 %v1968_v23  ;;  %v1988_v0 = vpack.c.bf16 %v740_v44, %v736_v20  ;;  %v742_v23 = vld [vmem:[#allocation6 + $0xd40] sm:$0xff]  ;;  %v783_v20 = vld [vmem:[#allocation6 + $0xe88] sm:$0xff]  ;;  %v817_v57 = vld [vmem:[#allocation6 + $0xf98] sm:$0xff] }
 0x116   :  { %1715 = vmatprep.subr.bf16.mxu0 %v1714_v24  ;;  %1971 = vmatprep.subr.bf16.mxu1 %v1970_v28  ;;  %v1990_v24 = vpack.c.bf16 %v749_v45, %v745_v7  ;;  %v744_v28 = vld [vmem:[#allocation6 + $0xd50] sm:$0xff]  ;;  %v1736_v3 = vpack.c.bf16 %v746_v1, %v742_v23  ;;  %v787_v44 = vld [vmem:[#allocation6 + $0xea8] sm:$0xff]  ;;  %v2010_v1 = vpack.c.bf16 %v789_v60, %v785_v59  ;;  %v821_v32 = vld [vmem:[#allocation6 + $0xfb8] sm:$0xff] }
 0x117   :  { %v1754_v23 = vpack.c.bf16 %v787_v44, %v783_v20  ;;  %v825_v20 = vld [vmem:[#allocation6 + $0xfd8] sm:$0xff] }
 0x118   :  { %1103 = vmatmul.mubr.f32.vlgmr.msra.gmra.mrb[0].mxu0 %v2609_v10  ;;  %1387 = vmatmul.mubr.f32.vlgmr.msra.gmra.mrb[0].mxu1 %v2609_v10  ;;  %v1724_v10 = vpack.c.bf16 %v722_v62, %v718_v55  ;;  %v1742_v55 = vpack.c.bf16 %v763_v22, %v759_v8  ;;  %v1998_v62 = vpack.c.bf16 %v765_v15, %v761_v9  ;;  %v801_v8 = vld [vmem:[#allocation6 + $0xf18] sm:$0xff] }
 0x119   :  { %1717 = vmatpush1.bf16.msra.mxu0 %v1716_v51  ;;  %1973 = vmatpush1.bf16.msra.mxu1 %v1972_v41  ;;  %v1992_v51 = vpack.c.bf16 %v748_v50, %v744_v28  ;;  %v750_v41 = vld [vmem:[#allocation6 + $0xd80] sm:$0xff]  ;;  %v791_v28 = vld [vmem:[#allocation6 + $0xec8] sm:$0xff]  ;;  %v805_v22 = vld [vmem:[#allocation6 + $0xf38] sm:$0xff] }
 0x11a   :  { %1719 = vmatprep.subr.bf16.mxu0 %v1718_v21  ;;  %1975 = vmatprep.subr.bf16.mxu1 %v1974_v6  ;;  %v1994_v21 = vpack.c.bf16 %v757_v5, %v753_v63  ;;  %v752_v6 = vld [vmem:[#allocation6 + $0xd90] sm:$0xff]  ;;  %v1740_v27 = vpack.c.bf16 %v754_v4, %v750_v41  ;;  %v795_v50 = vld [vmem:[#allocation6 + $0xee8] sm:$0xff]  ;;  %v2014_v4 = vpack.c.bf16 %v797_v61, %v793_v52  ;;  %v829_v44 = vld [vmem:[#allocation6 + $0xff8] sm:$0xff]  ;;  %v838_v61 = vsub.s32 1, %v2289_v11 }
 0x11b   :  { %1173 = vmatprep.mubr.f32.mxu0 %v887_v38  ;;  %1457 = vmatprep.mubr.f32.mxu1 %v887_v38  ;;  %v1996_v38 = vpack.c.bf16 %v756_v47, %v752_v6  ;;  %v1758_v41 = vpack.c.bf16 %v795_v50, %v791_v28  ;;  %v799_v6 = vld [vmem:[#allocation6 + $0xf08] sm:$0xff]  ;;  %v834_v28 = vsub.s32 0, %v2289_v11  ;;  %v842_v50 = vsub.s32 2, %v2289_v11  ;;  %v830_v52 = vld [vmem:[#allocation8] sm:$0xf] }
 0x11c   :  { %v803_v47 = vld [vmem:[#allocation6 + $0xf28] sm:$0xff] }
 0x11d   :  { %1721 = vmatpush1.bf16.msra.mxu0 %v1720_v42  ;;  %1977 = vmatpush1.bf16.msra.mxu1 %v1976_v26  ;;  %v758_v42 = vld [vmem:[#allocation6 + $0xdc0] sm:$0xff] }
 0x11e   :  { %1723 = vmatprep.subr.bf16.mxu0 %v1722_v16  ;;  %1979 = vmatprep.subr.bf16.mxu1 %v1978_v25  ;;  %v762_v26 = vld [vmem:[#allocation6 + $0xde0] sm:$0xff]  ;;  %v760_v16 = vld [vmem:[#allocation6 + $0xdd0] sm:$0xff] }
 0x11f   :  { %v764_v25 = vld [vmem:[#allocation6 + $0xdf0] sm:$0xff]  ;;  %v1744_v46 = vpack.c.bf16 %v762_v26, %v758_v42  ;;  %v1762_v42 = vpack.c.bf16 %v803_v47, %v799_v6  ;;  %v2018_v26 = vpack.c.bf16 %v805_v22, %v801_v8 }
 0x120   :  { %v2000_v48 = vpack.c.bf16 %v764_v25, %v760_v16  ;;  %v807_v16 = vld [vmem:[#allocation6 + $0xf48] sm:$0xff] }
 0x121   :  { %1725 = vmatpush1.bf16.msra.mxu0 %v1724_v10  ;;  %1981 = vmatpush1.bf16.msra.mxu1 %v1980_v56  ;;  %v766_v10 = vld [vmem:[#allocation6 + $0xe00] sm:$0xff]  ;;  %v811_v25 = vld [vmem:[#allocation6 + $0xf68] sm:$0xff] }
 0x122   :  { %1727 = vmatprep.subr.bf16.mxu0 %v1726_v14  ;;  %1983 = vmatprep.subr.bf16.mxu1 %v1982_v35  ;;  %v770_v56 = vld [vmem:[#allocation6 + $0xe20] sm:$0xff]  ;;  %v768_v14 = vld [vmem:[#allocation6 + $0xe10] sm:$0xff] }
 0x123   :  { %v772_v35 = vld [vmem:[#allocation6 + $0xe30] sm:$0xff]  ;;  %v1748_v36 = vpack.c.bf16 %v770_v56, %v766_v10  ;;  %v1766_v10 = vpack.c.bf16 %v811_v25, %v807_v16  ;;  %v2022_v56 = vpack.c.bf16 %v813_v49, %v809_v29 }
 0x124   :  { %v2004_v17 = vpack.c.bf16 %v772_v35, %v768_v14  ;;  %v815_v14 = vld [vmem:[#allocation6 + $0xf88] sm:$0xff] }
 0x125   :  { %1729 = vmatpush1.bf16.msra.mxu0 %v1728_v18  ;;  %1985 = vmatpush1.bf16.msra.mxu1 %v1984_v37  ;;  %v774_v18 = vld [vmem:[#allocation6 + $0xe40] sm:$0xff]  ;;  %v819_v35 = vld [vmem:[#allocation6 + $0xfa8] sm:$0xff] }
 0x126   :  { %1731 = vmatprep.subr.bf16.mxu0 %v1730_v43  ;;  %1987 = vmatprep.subr.bf16.mxu1 %v1986_v19  ;;  %v778_v37 = vld [vmem:[#allocation6 + $0xe60] sm:$0xff]  ;;  %v776_v43 = vld [vmem:[#allocation6 + $0xe50] sm:$0xff] }
 0x127   :  { %v780_v19 = vld [vmem:[#allocation6 + $0xe70] sm:$0xff]  ;;  %v1752_v7 = vpack.c.bf16 %v778_v37, %v774_v18  ;;  %v1770_v18 = vpack.c.bf16 %v819_v35, %v815_v14  ;;  %v2026_v37 = vpack.c.bf16 %v821_v32, %v817_v57 }
 0x128   :  { %v2008_v45 = vpack.c.bf16 %v780_v19, %v776_v43  ;;  %v823_v43 = vld [vmem:[#allocation6 + $0xfc8] sm:$0xff] }
 0x129   :  { %1733 = vmatpush1.bf16.msra.mxu0 %v1732_v40  ;;  %1989 = vmatpush1.bf16.msra.mxu1 %v1988_v0  ;;  %v782_v40 = vld [vmem:[#allocation6 + $0xe80] sm:$0xff]  ;;  %v827_v19 = vld [vmem:[#allocation6 + $0xfe8] sm:$0xff] }
 0x12a   :  { %1735 = vmatprep.subr.bf16.mxu0 %v1734_v2  ;;  %1991 = vmatprep.subr.bf16.mxu1 %v1990_v24  ;;  %v786_v0 = vld [vmem:[#allocation6 + $0xea0] sm:$0xff]  ;;  %v784_v2 = vld [vmem:[#allocation6 + $0xe90] sm:$0xff] }
 0x12b   :  { %v788_v24 = vld [vmem:[#allocation6 + $0xeb0] sm:$0xff]  ;;  %v1756_v63 = vpack.c.bf16 %v786_v0, %v782_v40  ;;  %v2030_v40 = vpack.c.bf16 %v829_v44, %v825_v20  ;;  %v826_v0 = vld [vmem:[#allocation6 + $0xfe0] sm:$0xff] }
 0x12c   :  { %v2012_v5 = vpack.c.bf16 %v788_v24, %v784_v2 }
 0x12d   :  { %1737 = vmatpush1.bf16.msra.mxu0 %v1736_v3  ;;  %1993 = vmatpush1.bf16.msra.mxu1 %v1992_v51  ;;  %v790_v3 = vld [vmem:[#allocation6 + $0xec0] sm:$0xff] }
 0x12e   :  { %1739 = vmatprep.subr.bf16.mxu0 %v1738_v54  ;;  %1995 = vmatprep.subr.bf16.mxu1 %v1994_v21  ;;  %v794_v51 = vld [vmem:[#allocation6 + $0xee0] sm:$0xff]  ;;  %v792_v54 = vld [vmem:[#allocation6 + $0xed0] sm:$0xff] }
 0x12f   :  { %v796_v21 = vld [vmem:[#allocation6 + $0xef0] sm:$0xff]  ;;  %v1760_v9 = vpack.c.bf16 %v794_v51, %v790_v3  ;;  %v843_v3 = vrot.slane %v830_v52, %v842_v50  ;;  %v1468_v51 = vld [vmem:[#allocation9] sm:$0xf] }
 0x130   :  { %v2016_v15 = vpack.c.bf16 %v796_v21, %v792_v54  ;;  %v1473_v47 = vrot.slane %v1468_v51, %v834_v28 }
 0x131   :  { %1741 = vmatpush1.bf16.msra.mxu0 %v1740_v27  ;;  %1997 = vmatpush1.bf16.msra.mxu1 %v1996_v38  ;;  %v798_v27 = vld [vmem:[#allocation6 + $0xf00] sm:$0xff] }
 0x132   :  { %1743 = vmatprep.subr.bf16.mxu0 %v1742_v55  ;;  %1999 = vmatprep.subr.bf16.mxu1 %v1998_v62  ;;  %v802_v38 = vld [vmem:[#allocation6 + $0xf20] sm:$0xff]  ;;  %v800_v55 = vld [vmem:[#allocation6 + $0xf10] sm:$0xff] }
 0x133   :  { %v804_v62 = vld [vmem:[#allocation6 + $0xf30] sm:$0xff]  ;;  %v1764_v53 = vpack.c.bf16 %v802_v38, %v798_v27  ;;  %v1477_v27 = vrot.slane %v1468_v51, %v838_v61 }
 0x134   :  { %v2020_v30 = vpack.c.bf16 %v804_v62, %v800_v55 }
 0x135   :  { %1745 = vmatpush1.bf16.msra.mxu0 %v1744_v46  ;;  %2001 = vmatpush1.bf16.msra.mxu1 %v2000_v48  ;;  %v806_v46 = vld [vmem:[#allocation6 + $0xf40] sm:$0xff] }
 0x136   :  { %1747 = vmatprep.subr.bf16.mxu0 %v1746_v31  ;;  %2003 = vmatprep.subr.bf16.mxu1 %v2002_v13  ;;  %v810_v48 = vld [vmem:[#allocation6 + $0xf60] sm:$0xff]  ;;  %v808_v31 = vld [vmem:[#allocation6 + $0xf50] sm:$0xff] }
 0x137   :  { %v812_v13 = vld [vmem:[#allocation6 + $0xf70] sm:$0xff]  ;;  %v1768_v33 = vpack.c.bf16 %v810_v48, %v806_v46 }
 0x138   :  { %v2024_v58 = vpack.c.bf16 %v812_v13, %v808_v31  ;;  %v1521_v13 = vld [vmem:[#allocation3] ss:$0 sm:$0xff] }
 0x139   :  { %1749 = vmatpush1.bf16.msra.mxu0 %v1748_v36  ;;  %2005 = vmatpush1.bf16.msra.mxu1 %v2004_v17  ;;  %v814_v36 = vld [vmem:[#allocation6 + $0xf80] sm:$0xff] }
 0x13a   :  { %1751 = vmatprep.subr.bf16.mxu0 %v1750_v34  ;;  %2007 = vmatprep.subr.bf16.mxu1 %v2006_v39  ;;  %v818_v17 = vld [vmem:[#allocation6 + $0xfa0] sm:$0xff]  ;;  %v816_v34 = vld [vmem:[#allocation6 + $0xf90] sm:$0xff] }
 0x13b   :  { %v820_v39 = vld [vmem:[#allocation6 + $0xfb0] sm:$0xff]  ;;  %v1772_v59 = vpack.c.bf16 %v818_v17, %v814_v36 }
 0x13c   :  { %v2028_v60 = vpack.c.bf16 %v820_v39, %v816_v34 }
 0x13d   :  { %1753 = vmatpush1.bf16.msra.mxu0 %v1752_v7  ;;  %2009 = vmatpush1.bf16.msra.mxu1 %v2008_v45  ;;  %v822_v7 = vld [vmem:[#allocation6 + $0xfc0] sm:$0xff]  ;;  %v1774_v45 = vpack.c.bf16 %v827_v19, %v823_v43 }
 0x13e   :  { %1755 = vmatprep.subr.bf16.mxu0 %v1754_v23  ;;  %2011 = vmatprep.subr.bf16.mxu1 %v2010_v1  ;;  %v824_v23 = vld [vmem:[#allocation6 + $0xfd0] sm:$0xff]  ;;  %v1776_v2 = vpack.c.bf16 %v826_v0, %v822_v7 }
 0x13f   :  { %v828_v1 = vld [vmem:[#allocation6 + $0xff0] sm:$0xff] }
 0x140   :  { %v2032_v24 = vpack.c.bf16 %v828_v1, %v824_v23 }
 0x141   :  { %1757 = vmatpush1.bf16.msra.mxu0 %v1756_v63  ;;  %2013 = vmatpush1.bf16.msra.mxu1 %v2012_v5  ;;  %v846_v63 = vsub.s32 3, %v2289_v11  ;;  %v835_v5 = vrot.slane %v830_v52, %v834_v28 }
 0x142   :  { %1759 = vmatprep.subr.bf16.mxu0 %v1758_v41  ;;  %2015 = vmatprep.subr.bf16.mxu1 %v2014_v4  ;;  %v839_v41 = vrot.slane %v830_v52, %v838_v61 }
 0x143   :  { %v847_v4 = vrot.slane %v830_v52, %v846_v63  ;;  %v1485_v62 = vrot.slane %v1468_v51, %v846_v63 }
 0x145   :  { %1761 = vmatpush1.bf16.msra.mxu0 %v1760_v9  ;;  %2017 = vmatpush1.bf16.msra.mxu1 %v2016_v15  ;;  %v1481_v9 = vrot.slane %v1468_v51, %v842_v50 }
 0x146   :  { %1763 = vmatprep.subr.bf16.mxu0 %v1762_v42  ;;  %2019 = vmatprep.subr.bf16.mxu1 %v2018_v26 }
 0x149   :  { %1765 = vmatpush1.bf16.msra.mxu0 %v1764_v53  ;;  %2021 = vmatpush1.bf16.msra.mxu1 %v2020_v30 }
 0x14a   :  { %1767 = vmatprep.subr.bf16.mxu0 %v1766_v10  ;;  %2023 = vmatprep.subr.bf16.mxu1 %v2022_v56 }
 0x14d   :  { %1769 = vmatpush1.bf16.msra.mxu0 %v1768_v33  ;;  %2025 = vmatpush1.bf16.msra.mxu1 %v2024_v58 }
 0x14e   :  { %1771 = vmatprep.subr.bf16.mxu0 %v1770_v18  ;;  %2027 = vmatprep.subr.bf16.mxu1 %v2026_v37 }
 0x151   :  { %1773 = vmatpush1.bf16.msra.mxu0 %v1772_v59  ;;  %2029 = vmatpush1.bf16.msra.mxu1 %v2028_v60 }
 0x152   :  { %1775 = vmatprep.subr.bf16.mxu0 %v1774_v45  ;;  %2031 = vmatprep.subr.bf16.mxu1 %v2030_v40 }
 0x155   :  { %1777 = vmatpush1.bf16.msra.mxu0 %v1776_v2  ;;  %2033 = vmatpush1.bf16.msra.mxu1 %v2032_v24 }
 0x158   :  { %1174 = vmatmul.mubr.f32.vlgmr.msra.gmra.mrb[0].mxu0 %v2616_v12  ;;  %1458 = vmatmul.mubr.f32.vlgmr.msra.gmra.mrb[0].mxu1 %v2616_v12 }
 0x22b   :  { %v1175_v54 = vpop.f32.mrb[0].mxu0  ;;  %v1459_v21 = vpop.f32.mrb[0].mxu1 }
 0x22c   :  { %v2034_v6 = vadd.f32 %v1175_v54, %v835_v5  ;;  %v2036_v8 = vadd.f32 %v1459_v21, %v843_v3  ;;  %v1177_v12 = vpop.f32.mrb[1].mxu0  ;;  %v1461_v22 = vpop.f32.mrb[1].mxu1 }
 0x22d   :  { %v2035_v15 = vadd.f32 %v1177_v12, %v839_v41  ;;  %v2037_v38 = vadd.f32 %v1461_v22, %v847_v4 }
 0x22e   :  { %v1464_v42 = vmax.f32 %v2034_v6, 0.0  ;;  %v1466_v26 = vmax.f32 %v2036_v8, 0.0 }
 0x22f   :  { %v1465_v55 = vmax.f32 %v2035_v15, 0.0  ;;  %v1467_v11 = vmax.f32 %v2037_v38, 0.0 }
 0x230   :  { %v1490_v16 = vmul.f32 %v1473_v47, %v1464_v42  ;;  %v1492_v25 = vmul.f32 %v1481_v9, %v1466_v26 }
 0x231   :  { %v1491_v29 = vmul.f32 %v1477_v27, %v1465_v55  ;;  %v1493_v53 = vmul.f32 %v1485_v62, %v1467_v11 }
 0x232   :  { %v1495_v49 = vsel %vm1494_vm4, %v1490_v16, 0.0  ;;  %v1498_v48 = vsel %vm1494_vm4, %v1492_v25, 0.0 }
 0x233   :  { %v1496_v30 = vsel %vm1494_vm4, %v1491_v29, 0.0  ;;  %v1500_v56 = vsel %vm1494_vm4, %v1493_v53, 0.0 }
 0x234   :  { %v1497_v46 = vadd.f32 %v1496_v30, %v1495_v49 }
 0x236   :  { %v1499_v10 = vadd.f32 %v1498_v48, %v1497_v46 }
 0x238   :  { %v1501_v31 = vadd.f32 %v1500_v56, %v1499_v10 }
 0x23a   :  { %1502 = vadd.xlane.f32.xlu0 %v1501_v31 }
 0x2c7   :  { %v1503_v14 = vpop.xlane.xlu0 %1502 }
 0x2c8   :  { %v1511_v35 = vadd.f32 %v1521_v13, %v1503_v14 }
 0x2ca   :  { %1513 = vst.msk [vmem:[%s2636_s5] sm:$0x3] %vm1512_vm5, %v1511_v35 }
 0x2cb   :  { %1518 = vsyncpa [#allocation5], 1 }
 0x2cc   :  { %1519 = vsyncpa [#allocation7], 1 }
 0x2cd   :  { %1520 = vsyncpa [#allocation10], 1 }

</bundles_post_ra>
